<compile_context>
chip_gen: v5e
topology: v5e:2x2
jax: 0.10.0
libtpu: 0.0.40
codegen_flags: <defaults>
</compile_context>

<pallas_src>
import jax
import jax.numpy as jnp
from jax.experimental import pallas as pl
from jax.experimental.pallas import tpu as pltpu

# ---------------- tiny BERT config (deterministic, synthetic) ----------------
B, S, H = 2, 8, 32          # batch, seq, hidden
NH, HD = 4, 8               # heads, head dim  (NH * HD == H)
FF = 64                     # intermediate (FFN) size
V = 128                     # vocab size (multiple of 128 -> lane-dense logits store)
MAX_POS = 16                # max position embeddings
TYPE_VOCAB = 2              # token type vocab
NLAYERS = 2                 # encoder layers
EPS = 1e-12                 # BERT LayerNorm eps

ROWS = B * S                # batch folded into matmul rows
H3 = 3 * H                  # stacked q|k|v width (96)

# -------- packed-buffer layout constants (column/row offsets are all static) --------
WH_PER_LAYER = H3 + H + FF                  # [Wq|Wk|Wv](96) + Wo(32) + Wi(64) = 192 cols
WH_MLM_OFF = NLAYERS * WH_PER_LAYER         # 384
WH_COLS = WH_MLM_OFF + H + V                # + MLM transform(32) + tied decoder(128) = 544
WF_COLS = NLAYERS * H                       # Wo2 (FF,H) per layer stacked along columns

VROWS_PER_LAYER = 8                         # bqkv, bo, ln1g, ln1b, bi, bo2, ln2g, ln2b
VROW_EMB_G, VROW_EMB_B = 0, 1
VROW_LAYER0 = 2
VROW_MLM = VROW_LAYER0 + NLAYERS * VROWS_PER_LAYER   # bt, mlm_ln_g, mlm_ln_b, bd
NVROWS = VROW_MLM + 4                       # 22
VPAD = 128                                  # every vector row padded to 128 lanes


# ---------------- shared math helpers ----------------
def _ln(x, g, b):
    mu = jnp.mean(x, axis=-1, keepdims=True)
    var = jnp.mean(jnp.square(x - mu), axis=-1, keepdims=True)
    return (x - mu) * jax.lax.rsqrt(var + EPS) * g + b


def _gelu_tanh(x):
    # tanh-approximate gelu: runs on the EUP (free bundle slot) instead of a VPU erf
    # polynomial.  HF BERT default is exact erf; delta is far below the check tolerance.
    return jax.nn.gelu(x, approximate=True)


def _gelu_exact(x):
    return jax.nn.gelu(x, approximate=False)


# ---------------- the fused Pallas kernel ----------------
def fused_bert_kernel(emb_ref, mask_ref, wh_ref, wf_ref, vec_ref, o_ref):
    f32, bf16 = jnp.float32, jnp.bfloat16
    vecs = vec_ref[...]                                   # (NVROWS, 128) f32, single load

    def vec(row, width):                                  # static (1, width) view of a row
        return vecs[row:row + 1, :width]

    # Embedding LayerNorm; emb enters pre-flattened as (ROWS, H).
    x = _ln(emb_ref[...], vec(VROW_EMB_G, H), vec(VROW_EMB_B, H))       # (ROWS, H) f32
    mask_add = mask_ref[...]                                            # (B, 1, S) additive
    scale = 1.0 / (HD ** 0.5)

    for l in range(NLAYERS):                              # static, fully unrolled
        c0 = l * WH_PER_LAYER
        r0 = VROW_LAYER0 + l * VROWS_PER_LAYER

        # ---- fused QKV: ONE lane-dense matmul (16,32)@(32,96), bf16 operands ----
        w_qkv = wh_ref[:, c0:c0 + H3]                                   # (H, 96) bf16
        qkv = jnp.dot(x.astype(bf16), w_qkv,
                      preferred_element_type=f32) + vec(r0 + 0, H3)     # (ROWS, 96) f32

        # ---- per-head attention (static head loop, batched over B) ----
        ctx_heads = []
        for n in range(NH):
            qn = qkv[:, n * HD:(n + 1) * HD].reshape(B, S, HD)
            kn = qkv[:, H + n * HD:H + (n + 1) * HD].reshape(B, S, HD)
            vn = qkv[:, 2 * H + n * HD:2 * H + (n + 1) * HD].reshape(B, S, HD)
            s = jnp.einsum("bqd,bkd->bqk", qn.astype(bf16), kn.astype(bf16),
                           preferred_element_type=f32) * scale + mask_add
            s = s - jnp.max(s, axis=-1, keepdims=True)
            p = jnp.exp(s)
            p = p * pl.reciprocal(jnp.sum(p, axis=-1, keepdims=True), approx=True)
            ctx_n = jnp.einsum("bqk,bkd->bqd", p.astype(bf16), vn.astype(bf16),
                               preferred_element_type=f32)              # (B, S, HD)
            ctx_heads.append(ctx_n.reshape(ROWS, HD))
        ctx = jnp.concatenate(ctx_heads, axis=-1)                       # (ROWS, H)

        # ---- output projection: single concat-heads matmul (head-sum folded into MXU) ----
        w_o = wh_ref[:, c0 + H3:c0 + H3 + H]                            # (H, H) bf16
        attn = jnp.dot(ctx.astype(bf16), w_o,
                       preferred_element_type=f32) + vec(r0 + 1, H)
        x = _ln(x + attn, vec(r0 + 2, H), vec(r0 + 3, H))

        # ---- feed-forward ----
        w_i = wh_ref[:, c0 + H3 + H:c0 + WH_PER_LAYER]                  # (H, FF) bf16
        inter = _gelu_tanh(jnp.dot(x.astype(bf16), w_i,
                                   preferred_element_type=f32) + vec(r0 + 4, FF))
        w_o2 = wf_ref[:, l * H:(l + 1) * H]                             # (FF, H) bf16
        ffn = jnp.dot(inter.astype(bf16), w_o2,
                      preferred_element_type=f32) + vec(r0 + 5, H)
        x = _ln(x + ffn, vec(r0 + 6, H), vec(r0 + 7, H))

    # ---- MLM head: dense(H->H) + gelu + LayerNorm, then tied decoder (H->V) + bias ----
    w_t = wh_ref[:, WH_MLM_OFF:WH_MLM_OFF + H]                          # (H, H) bf16
    t = _gelu_tanh(jnp.dot(x.astype(bf16), w_t,
                           preferred_element_type=f32) + vec(VROW_MLM + 0, H))
    t = _ln(t, vec(VROW_MLM + 1, H), vec(VROW_MLM + 2, H))
    w_d = wh_ref[:, WH_MLM_OFF + H:WH_COLS]                             # (H, V) bf16
    o_ref[...] = jnp.dot(t.astype(bf16), w_d,
                         preferred_element_type=f32) + vec(VROW_MLM + 3, V)   # (ROWS, 128)


# ---------------- one-time host-side weight packing (hoisted out of the forward) ----------------
def pack_weights(params):
    """Pack every weight into three buffers: wh (H-row matrices, bf16), wf (FF-row
    matrices, bf16), vecs (all bias / LN vectors as 128-lane rows, f32)."""
    def pad_row(v):
        v = jnp.asarray(v, jnp.float32).reshape(-1)
        return jnp.pad(v, (0, VPAD - v.shape[0]))

    wh_cols, wf_cols, vec_rows = [], [], []
    vec_rows.append(pad_row(params["emb_ln_g"]))
    vec_rows.append(pad_row(params["emb_ln_b"]))
    for lp in params["layers"]:
        (wq, bq, wk, bk, wv, bv, wo, bo, g1, b1, wi, bi, wo2, bo2, g2, b2) = lp
        wh_cols.append(jnp.concatenate([wq, wk, wv, wo, wi], axis=1))   # (H, 192)
        wf_cols.append(wo2)                                             # (FF, H)
        vec_rows += [pad_row(jnp.concatenate([bq.reshape(-1), bk.reshape(-1),
                                              bv.reshape(-1)])),        # bqkv (96)
                     pad_row(bo), pad_row(g1), pad_row(b1),
                     pad_row(bi), pad_row(bo2), pad_row(g2), pad_row(b2)]
    wh_cols.append(jnp.concatenate([params["mlm_transform_w"],
                                    params["mlm_decoder_w"]], axis=1))  # (H, 160)
    vec_rows += [pad_row(params["mlm_transform_b"]), pad_row(params["mlm_ln_g"]),
                 pad_row(params["mlm_ln_b"]), pad_row(params["mlm_decoder_b"])]

    wh = jnp.concatenate(wh_cols, axis=1).astype(jnp.bfloat16)          # (H, 544)
    wf = jnp.concatenate(wf_cols, axis=1).astype(jnp.bfloat16)          # (FF, 64)
    vecs = jnp.stack(vec_rows, axis=0)                                  # (22, 128) f32
    assert wh.shape == (H, WH_COLS) and wf.shape == (FF, WF_COLS) and vecs.shape == (NVROWS, VPAD)
    return {"wh": wh, "wf": wf, "vecs": vecs}


# ---------------- full forward (single grid-less pallas_call) ----------------
@jax.jit
def bert_mlm_forward(packed, emb_tables, input_ids, attention_mask, token_type_ids):
    # Embedding lookups (gathers) are plain-JAX glue; everything else runs in one kernel.
    positions = jnp.arange(S, dtype=jnp.int32)
    emb = (emb_tables["word_emb"][input_ids]
           + emb_tables["pos_emb"][positions][None, :, :]
           + emb_tables["type_emb"][token_type_ids])                    # (B, S, H)
    emb = emb.reshape(ROWS, H)                                          # batch folded into rows
    mask_add = ((1.0 - attention_mask.astype(jnp.float32)) * -1e9)[:, None, :]   # (B, 1, S)

    logits = pl.pallas_call(
        fused_bert_kernel,
        out_shape=jax.ShapeDtypeStruct((ROWS, V), jnp.float32),
        in_specs=[pl.BlockSpec(memory_space=pltpu.MemorySpace.VMEM)] * 5,
        out_specs=pl.BlockSpec(memory_space=pltpu.MemorySpace.VMEM),
    )(emb, mask_add, packed["wh"], packed["wf"], packed["vecs"])
    return logits.reshape(B, S, V)


# ---------------- parameter construction (deterministic, synthetic) ----------------
def init_params(key):
    def nrm(k, shape):
        return 0.02 * jax.random.normal(k, shape, dtype=jnp.float32)

    keys = iter(jax.random.split(key, 64))
    p = {}
    p["word_emb"] = nrm(next(keys), (V, H))
    p["pos_emb"] = nrm(next(keys), (MAX_POS, H))
    p["type_emb"] = nrm(next(keys), (TYPE_VOCAB, H))
    p["emb_ln_g"] = jnp.ones((1, H), jnp.float32)
    p["emb_ln_b"] = jnp.zeros((1, H), jnp.float32)

    layers = []
    for _ in range(NLAYERS):
        lp = [
            nrm(next(keys), (H, H)), jnp.zeros((1, H), jnp.float32),    # wq, bq
            nrm(next(keys), (H, H)), jnp.zeros((1, H), jnp.float32),    # wk, bk
            nrm(next(keys), (H, H)), jnp.zeros((1, H), jnp.float32),    # wv, bv
            nrm(next(keys), (H, H)), jnp.zeros((1, H), jnp.float32),    # wo, bo
            jnp.ones((1, H), jnp.float32), jnp.zeros((1, H), jnp.float32),   # ln1
            nrm(next(keys), (H, FF)), jnp.zeros((1, FF), jnp.float32),  # wi, bi
            nrm(next(keys), (FF, H)), jnp.zeros((1, H), jnp.float32),   # wo2, bo2
            jnp.ones((1, H), jnp.float32), jnp.zeros((1, H), jnp.float32),   # ln2
        ]
        layers.append(lp)
    p["layers"] = layers

    p["mlm_transform_w"] = nrm(next(keys), (H, H))
    p["mlm_transform_b"] = jnp.zeros((1, H), jnp.float32)
    p["mlm_ln_g"] = jnp.ones((1, H), jnp.float32)
    p["mlm_ln_b"] = jnp.zeros((1, H), jnp.float32)
    p["mlm_decoder_w"] = p["word_emb"].T          # tied to word embeddings, (H, V)
    p["mlm_decoder_b"] = jnp.zeros((1, V), jnp.float32)
    return p


# ---------------- pure-JAX reference (f32, exact erf gelu, standard multi-head) ----------------
def reference_forward(params, input_ids, attention_mask, token_type_ids):
    positions = jnp.arange(S, dtype=jnp.int32)
    x = (params["word_emb"][input_ids]
         + params["pos_emb"][positions][None, :, :]
         + params["type_emb"][token_type_ids])
    x = _ln(x, params["emb_ln_g"], params["emb_ln_b"])
    mask_add = ((1.0 - attention_mask.astype(jnp.float32)) * -1e9)[:, None, None, :]
    for lp in params["layers"]:
        (wq, bq, wk, bk, wv, bv, wo, bo, g1, b1, wi, bi, wo2, bo2, g2, b2) = lp
        q = (x @ wq + bq).reshape(B, S, NH, HD).transpose(0, 2, 1, 3)
        k = (x @ wk + bk).reshape(B, S, NH, HD).transpose(0, 2, 1, 3)
        v = (x @ wv + bv).reshape(B, S, NH, HD).transpose(0, 2, 1, 3)
        s = jnp.einsum("bhqd,bhkd->bhqk", q, k) / jnp.sqrt(jnp.float32(HD)) + mask_add
        p = jax.nn.softmax(s, axis=-1)
        ctx = jnp.einsum("bhqk,bhkd->bhqd", p, v).transpose(0, 2, 1, 3).reshape(B, S, H)
        x = _ln(x + (ctx @ wo + bo), g1, b1)
        x = _ln(x + (_gelu_exact(x @ wi + bi) @ wo2 + bo2), g2, b2)
    t = _ln(_gelu_exact(x @ params["mlm_transform_w"] + params["mlm_transform_b"]),
            params["mlm_ln_g"], params["mlm_ln_b"])
    return t @ params["mlm_decoder_w"] + params["mlm_decoder_b"]


if __name__ == "__main__":
    key = jax.random.PRNGKey(0)
    kp, ki = jax.random.split(key)
    params = init_params(kp)

    packed = pack_weights(params)                       # one-time repack (hoisted)
    emb_tables = {"word_emb": params["word_emb"],
                  "pos_emb": params["pos_emb"],
                  "type_emb": params["type_emb"]}

    input_ids = jax.random.randint(ki, (B, S), 0, V, dtype=jnp.int32)
    attention_mask = jnp.ones((B, S), jnp.float32).at[1, S - 2:].set(0.0)  # pad last 2 of row 1
    token_type_ids = jnp.zeros((B, S), jnp.int32)

    logits = bert_mlm_forward(packed, emb_tables, input_ids, attention_mask, token_type_ids)
    logits = jax.block_until_ready(logits)
    assert logits.shape == (B, S, V)

    ref = reference_forward(params, input_ids, attention_mask, token_type_ids)
    if not jnp.allclose(logits, ref, atol=2e-2, rtol=2e-2):
        err = float(jnp.max(jnp.abs(logits - ref)))
        raise AssertionError(f"Pallas output does not match reference (max abs err {err})")

    print("KERNEL_OK")
</pallas_src>

<mosaic_0001>
module attributes {stable_mosaic.version = 11 : i64} {
  func.func @fused_bert_kernel(%arg0: memref<16x32xf32, #tpu.memory_space<vmem>>, %arg1: memref<2x1x8xf32, #tpu.memory_space<vmem>>, %arg2: memref<32x544xbf16, #tpu.memory_space<vmem>>, %arg3: memref<64x64xbf16, #tpu.memory_space<vmem>>, %arg4: memref<22x128xf32, #tpu.memory_space<vmem>>, %arg5: memref<16x128xf32, #tpu.memory_space<vmem>>) attributes {dimension_semantics = [], scalar_prefetch = 0 : i64, scratch_operands = 0 : i64, tpu.core_type = #tpu.core_type<tc>} {
    %c0 = arith.constant 0 : index
    %c0_0 = arith.constant 0 : index
    %0 = vector.load %arg4[%c0, %c0_0] : memref<22x128xf32, #tpu.memory_space<vmem>>, vector<22x128xf32>
    %c0_1 = arith.constant 0 : index
    %c0_2 = arith.constant 0 : index
    %1 = vector.load %arg0[%c0_1, %c0_2] : memref<16x32xf32, #tpu.memory_space<vmem>>, vector<16x32xf32>
    %2 = vector.extract_strided_slice %0 {offsets = [0, 0], sizes = [1, 32], strides = [1, 1]} : vector<22x128xf32> to vector<1x32xf32>
    %3 = vector.extract_strided_slice %0 {offsets = [1, 0], sizes = [1, 32], strides = [1, 1]} : vector<22x128xf32> to vector<1x32xf32>
    %cst = arith.constant dense<0.000000e+00> : vector<16xf32>
    %4 = vector.multi_reduction <add>, %1, %cst [1] : vector<16x32xf32> to vector<16xf32>
    %5 = vector.shape_cast %4 : vector<16xf32> to vector<16x1xf32>
    %cst_3 = arith.constant 3.200000e+01 : f32
    %6 = vector.broadcast %cst_3 : f32 to vector<16x1xf32>
    %7 = arith.divf %5, %6 : vector<16x1xf32>
    %8 = vector.broadcast %7 : vector<16x1xf32> to vector<16x32xf32>
    %9 = arith.subf %1, %8 : vector<16x32xf32>
    %10 = arith.mulf %9, %9 : vector<16x32xf32>
    %cst_4 = arith.constant dense<0.000000e+00> : vector<16xf32>
    %11 = vector.multi_reduction <add>, %10, %cst_4 [1] : vector<16x32xf32> to vector<16xf32>
    %12 = vector.shape_cast %11 : vector<16xf32> to vector<16x1xf32>
    %cst_5 = arith.constant 3.200000e+01 : f32
    %13 = vector.broadcast %cst_5 : f32 to vector<16x1xf32>
    %14 = arith.divf %12, %13 : vector<16x1xf32>
    %15 = vector.broadcast %7 : vector<16x1xf32> to vector<16x32xf32>
    %16 = arith.subf %1, %15 : vector<16x32xf32>
    %cst_6 = arith.constant 9.99999996E-13 : f32
    %17 = vector.broadcast %cst_6 : f32 to vector<16x1xf32>
    %18 = arith.addf %14, %17 : vector<16x1xf32>
    %19 = math.rsqrt %18 : vector<16x1xf32>
    %20 = vector.broadcast %19 : vector<16x1xf32> to vector<16x32xf32>
    %21 = arith.mulf %16, %20 : vector<16x32xf32>
    %22 = vector.broadcast %2 : vector<1x32xf32> to vector<16x32xf32>
    %23 = arith.mulf %21, %22 : vector<16x32xf32>
    %24 = vector.broadcast %3 : vector<1x32xf32> to vector<16x32xf32>
    %25 = arith.addf %23, %24 : vector<16x32xf32>
    %c0_7 = arith.constant 0 : index
    %c0_8 = arith.constant 0 : index
    %c0_9 = arith.constant 0 : index
    %26 = vector.load %arg1[%c0_7, %c0_8, %c0_9] : memref<2x1x8xf32, #tpu.memory_space<vmem>>, vector<2x1x8xf32>
    %c0_10 = arith.constant 0 : index
    %c0_11 = arith.constant 0 : index
    %27 = vector.load %arg2[%c0_10, %c0_11] : memref<32x544xbf16, #tpu.memory_space<vmem>>, vector<32x96xbf16>
    %28 = arith.truncf %25 : vector<16x32xf32> to vector<16x32xbf16>
    %cst_12 = arith.constant dense<0.000000e+00> : vector<16x96xf32>
    %29 = tpu.matmul %28, %27, %cst_12 {dimension_numbers = #tpu.dot_dimension_numbers<[1], [0], [0], [1], [0, 0, 1, 1], [], []>} : vector<16x32xbf16>, vector<32x96xbf16>, vector<16x96xf32> -> vector<16x96xf32>
    %30 = vector.extract_strided_slice %0 {offsets = [2, 0], sizes = [1, 96], strides = [1, 1]} : vector<22x128xf32> to vector<1x96xf32>
    %31 = vector.broadcast %30 : vector<1x96xf32> to vector<16x96xf32>
    %32 = arith.addf %29, %31 : vector<16x96xf32>
    %33 = vector.extract_strided_slice %32 {offsets = [0, 0], sizes = [16, 8], strides = [1, 1]} : vector<16x96xf32> to vector<16x8xf32>
    %34 = vector.shape_cast %33 : vector<16x8xf32> to vector<2x8x8xf32>
    %35 = vector.extract_strided_slice %32 {offsets = [0, 32], sizes = [16, 8], strides = [1, 1]} : vector<16x96xf32> to vector<16x8xf32>
    %36 = vector.shape_cast %35 : vector<16x8xf32> to vector<2x8x8xf32>
    %37 = vector.extract_strided_slice %32 {offsets = [0, 64], sizes = [16, 8], strides = [1, 1]} : vector<16x96xf32> to vector<16x8xf32>
    %38 = vector.shape_cast %37 : vector<16x8xf32> to vector<2x8x8xf32>
    %39 = arith.truncf %34 : vector<2x8x8xf32> to vector<2x8x8xbf16>
    %40 = arith.truncf %36 : vector<2x8x8xf32> to vector<2x8x8xbf16>
    "tpu.trace_start"() <{level = 10 : i32, message = "bqd,bkd->bqk"}> : () -> ()
    %cst_13 = arith.constant dense<0.000000e+00> : vector<2x8x8xf32>
    %41 = tpu.matmul %39, %40, %cst_13 {dimension_numbers = #tpu.dot_dimension_numbers<[2], [2], [1], [1], [0, 0, 0, 1, 1, 1], [0], [0]>} : vector<2x8x8xbf16>, vector<2x8x8xbf16>, vector<2x8x8xf32> -> vector<2x8x8xf32>
    "tpu.trace_stop"() : () -> ()
    %cst_14 = arith.constant 0.353553385 : f32
    %42 = vector.broadcast %cst_14 : f32 to vector<2x8x8xf32>
    %43 = arith.mulf %41, %42 : vector<2x8x8xf32>
    %44 = vector.broadcast %26 : vector<2x1x8xf32> to vector<2x8x8xf32>
    %45 = arith.addf %43, %44 : vector<2x8x8xf32>
    %cst_15 = arith.constant dense<0xFF800000> : vector<2x8xf32>
    %46 = vector.multi_reduction <maximumf>, %45, %cst_15 [2] : vector<2x8x8xf32> to vector<2x8xf32>
    %47 = vector.shape_cast %46 : vector<2x8xf32> to vector<2x8x1xf32>
    %48 = vector.broadcast %47 : vector<2x8x1xf32> to vector<2x8x8xf32>
    %49 = arith.subf %45, %48 : vector<2x8x8xf32>
    %50 = math.exp %49 : vector<2x8x8xf32>
    %cst_16 = arith.constant dense<0.000000e+00> : vector<2x8xf32>
    %51 = vector.multi_reduction <add>, %50, %cst_16 [2] : vector<2x8x8xf32> to vector<2x8xf32>
    %52 = vector.shape_cast %51 : vector<2x8xf32> to vector<2x8x1xf32>
    %53 = tpu.reciprocal %52 {approx = true} : vector<2x8x1xf32> -> vector<2x8x1xf32>
    %54 = vector.broadcast %53 : vector<2x8x1xf32> to vector<2x8x8xf32>
    %55 = arith.mulf %50, %54 : vector<2x8x8xf32>
    %56 = arith.truncf %55 : vector<2x8x8xf32> to vector<2x8x8xbf16>
    %57 = arith.truncf %38 : vector<2x8x8xf32> to vector<2x8x8xbf16>
    "tpu.trace_start"() <{level = 10 : i32, message = "bqk,bkd->bqd"}> : () -> ()
    %cst_17 = arith.constant dense<0.000000e+00> : vector<2x8x8xf32>
    %58 = tpu.matmul %56, %57, %cst_17 {dimension_numbers = #tpu.dot_dimension_numbers<[2], [1], [1], [2], [0, 0, 0, 1, 1, 2], [0], [0]>} : vector<2x8x8xbf16>, vector<2x8x8xbf16>, vector<2x8x8xf32> -> vector<2x8x8xf32>
    "tpu.trace_stop"() : () -> ()
    %59 = vector.shape_cast %58 : vector<2x8x8xf32> to vector<16x8xf32>
    %60 = vector.extract_strided_slice %32 {offsets = [0, 8], sizes = [16, 8], strides = [1, 1]} : vector<16x96xf32> to vector<16x8xf32>
    %61 = vector.shape_cast %60 : vector<16x8xf32> to vector<2x8x8xf32>
    %62 = vector.extract_strided_slice %32 {offsets = [0, 40], sizes = [16, 8], strides = [1, 1]} : vector<16x96xf32> to vector<16x8xf32>
    %63 = vector.shape_cast %62 : vector<16x8xf32> to vector<2x8x8xf32>
    %64 = vector.extract_strided_slice %32 {offsets = [0, 72], sizes = [16, 8], strides = [1, 1]} : vector<16x96xf32> to vector<16x8xf32>
    %65 = vector.shape_cast %64 : vector<16x8xf32> to vector<2x8x8xf32>
    %66 = arith.truncf %61 : vector<2x8x8xf32> to vector<2x8x8xbf16>
    %67 = arith.truncf %63 : vector<2x8x8xf32> to vector<2x8x8xbf16>
    "tpu.trace_start"() <{level = 10 : i32, message = "bqd,bkd->bqk"}> : () -> ()
    %cst_18 = arith.constant dense<0.000000e+00> : vector<2x8x8xf32>
    %68 = tpu.matmul %66, %67, %cst_18 {dimension_numbers = #tpu.dot_dimension_numbers<[2], [2], [1], [1], [0, 0, 0, 1, 1, 1], [0], [0]>} : vector<2x8x8xbf16>, vector<2x8x8xbf16>, vector<2x8x8xf32> -> vector<2x8x8xf32>
    "tpu.trace_stop"() : () -> ()
    %cst_19 = arith.constant 0.353553385 : f32
    %69 = vector.broadcast %cst_19 : f32 to vector<2x8x8xf32>
    %70 = arith.mulf %68, %69 : vector<2x8x8xf32>
    %71 = vector.broadcast %26 : vector<2x1x8xf32> to vector<2x8x8xf32>
    %72 = arith.addf %70, %71 : vector<2x8x8xf32>
    %cst_20 = arith.constant dense<0xFF800000> : vector<2x8xf32>
    %73 = vector.multi_reduction <maximumf>, %72, %cst_20 [2] : vector<2x8x8xf32> to vector<2x8xf32>
    %74 = vector.shape_cast %73 : vector<2x8xf32> to vector<2x8x1xf32>
    %75 = vector.broadcast %74 : vector<2x8x1xf32> to vector<2x8x8xf32>
    %76 = arith.subf %72, %75 : vector<2x8x8xf32>
    %77 = math.exp %76 : vector<2x8x8xf32>
    %cst_21 = arith.constant dense<0.000000e+00> : vector<2x8xf32>
    %78 = vector.multi_reduction <add>, %77, %cst_21 [2] : vector<2x8x8xf32> to vector<2x8xf32>
    %79 = vector.shape_cast %78 : vector<2x8xf32> to vector<2x8x1xf32>
    %80 = tpu.reciprocal %79 {approx = true} : vector<2x8x1xf32> -> vector<2x8x1xf32>
    %81 = vector.broadcast %80 : vector<2x8x1xf32> to vector<2x8x8xf32>
    %82 = arith.mulf %77, %81 : vector<2x8x8xf32>
    %83 = arith.truncf %82 : vector<2x8x8xf32> to vector<2x8x8xbf16>
    %84 = arith.truncf %65 : vector<2x8x8xf32> to vector<2x8x8xbf16>
    "tpu.trace_start"() <{level = 10 : i32, message = "bqk,bkd->bqd"}> : () -> ()
    %cst_22 = arith.constant dense<0.000000e+00> : vector<2x8x8xf32>
    %85 = tpu.matmul %83, %84, %cst_22 {dimension_numbers = #tpu.dot_dimension_numbers<[2], [1], [1], [2], [0, 0, 0, 1, 1, 2], [0], [0]>} : vector<2x8x8xbf16>, vector<2x8x8xbf16>, vector<2x8x8xf32> -> vector<2x8x8xf32>
    "tpu.trace_stop"() : () -> ()
    %86 = vector.shape_cast %85 : vector<2x8x8xf32> to vector<16x8xf32>
    %87 = vector.extract_strided_slice %32 {offsets = [0, 16], sizes = [16, 8], strides = [1, 1]} : vector<16x96xf32> to vector<16x8xf32>
    %88 = vector.shape_cast %87 : vector<16x8xf32> to vector<2x8x8xf32>
    %89 = vector.extract_strided_slice %32 {offsets = [0, 48], sizes = [16, 8], strides = [1, 1]} : vector<16x96xf32> to vector<16x8xf32>
    %90 = vector.shape_cast %89 : vector<16x8xf32> to vector<2x8x8xf32>
    %91 = vector.extract_strided_slice %32 {offsets = [0, 80], sizes = [16, 8], strides = [1, 1]} : vector<16x96xf32> to vector<16x8xf32>
    %92 = vector.shape_cast %91 : vector<16x8xf32> to vector<2x8x8xf32>
    %93 = arith.truncf %88 : vector<2x8x8xf32> to vector<2x8x8xbf16>
    %94 = arith.truncf %90 : vector<2x8x8xf32> to vector<2x8x8xbf16>
    "tpu.trace_start"() <{level = 10 : i32, message = "bqd,bkd->bqk"}> : () -> ()
    %cst_23 = arith.constant dense<0.000000e+00> : vector<2x8x8xf32>
    %95 = tpu.matmul %93, %94, %cst_23 {dimension_numbers = #tpu.dot_dimension_numbers<[2], [2], [1], [1], [0, 0, 0, 1, 1, 1], [0], [0]>} : vector<2x8x8xbf16>, vector<2x8x8xbf16>, vector<2x8x8xf32> -> vector<2x8x8xf32>
    "tpu.trace_stop"() : () -> ()
    %cst_24 = arith.constant 0.353553385 : f32
    %96 = vector.broadcast %cst_24 : f32 to vector<2x8x8xf32>
    %97 = arith.mulf %95, %96 : vector<2x8x8xf32>
    %98 = vector.broadcast %26 : vector<2x1x8xf32> to vector<2x8x8xf32>
    %99 = arith.addf %97, %98 : vector<2x8x8xf32>
    %cst_25 = arith.constant dense<0xFF800000> : vector<2x8xf32>
    %100 = vector.multi_reduction <maximumf>, %99, %cst_25 [2] : vector<2x8x8xf32> to vector<2x8xf32>
    %101 = vector.shape_cast %100 : vector<2x8xf32> to vector<2x8x1xf32>
    %102 = vector.broadcast %101 : vector<2x8x1xf32> to vector<2x8x8xf32>
    %103 = arith.subf %99, %102 : vector<2x8x8xf32>
    %104 = math.exp %103 : vector<2x8x8xf32>
    %cst_26 = arith.constant dense<0.000000e+00> : vector<2x8xf32>
    %105 = vector.multi_reduction <add>, %104, %cst_26 [2] : vector<2x8x8xf32> to vector<2x8xf32>
    %106 = vector.shape_cast %105 : vector<2x8xf32> to vector<2x8x1xf32>
    %107 = tpu.reciprocal %106 {approx = true} : vector<2x8x1xf32> -> vector<2x8x1xf32>
    %108 = vector.broadcast %107 : vector<2x8x1xf32> to vector<2x8x8xf32>
    %109 = arith.mulf %104, %108 : vector<2x8x8xf32>
    %110 = arith.truncf %109 : vector<2x8x8xf32> to vector<2x8x8xbf16>
    %111 = arith.truncf %92 : vector<2x8x8xf32> to vector<2x8x8xbf16>
    "tpu.trace_start"() <{level = 10 : i32, message = "bqk,bkd->bqd"}> : () -> ()
    %cst_27 = arith.constant dense<0.000000e+00> : vector<2x8x8xf32>
    %112 = tpu.matmul %110, %111, %cst_27 {dimension_numbers = #tpu.dot_dimension_numbers<[2], [1], [1], [2], [0, 0, 0, 1, 1, 2], [0], [0]>} : vector<2x8x8xbf16>, vector<2x8x8xbf16>, vector<2x8x8xf32> -> vector<2x8x8xf32>
    "tpu.trace_stop"() : () -> ()
    %113 = vector.shape_cast %112 : vector<2x8x8xf32> to vector<16x8xf32>
    %114 = vector.extract_strided_slice %32 {offsets = [0, 24], sizes = [16, 8], strides = [1, 1]} : vector<16x96xf32> to vector<16x8xf32>
    %115 = vector.shape_cast %114 : vector<16x8xf32> to vector<2x8x8xf32>
    %116 = vector.extract_strided_slice %32 {offsets = [0, 56], sizes = [16, 8], strides = [1, 1]} : vector<16x96xf32> to vector<16x8xf32>
    %117 = vector.shape_cast %116 : vector<16x8xf32> to vector<2x8x8xf32>
    %118 = vector.extract_strided_slice %32 {offsets = [0, 88], sizes = [16, 8], strides = [1, 1]} : vector<16x96xf32> to vector<16x8xf32>
    %119 = vector.shape_cast %118 : vector<16x8xf32> to vector<2x8x8xf32>
    %120 = arith.truncf %115 : vector<2x8x8xf32> to vector<2x8x8xbf16>
    %121 = arith.truncf %117 : vector<2x8x8xf32> to vector<2x8x8xbf16>
    "tpu.trace_start"() <{level = 10 : i32, message = "bqd,bkd->bqk"}> : () -> ()
    %cst_28 = arith.constant dense<0.000000e+00> : vector<2x8x8xf32>
    %122 = tpu.matmul %120, %121, %cst_28 {dimension_numbers = #tpu.dot_dimension_numbers<[2], [2], [1], [1], [0, 0, 0, 1, 1, 1], [0], [0]>} : vector<2x8x8xbf16>, vector<2x8x8xbf16>, vector<2x8x8xf32> -> vector<2x8x8xf32>
    "tpu.trace_stop"() : () -> ()
    %cst_29 = arith.constant 0.353553385 : f32
    %123 = vector.broadcast %cst_29 : f32 to vector<2x8x8xf32>
    %124 = arith.mulf %122, %123 : vector<2x8x8xf32>
    %125 = vector.broadcast %26 : vector<2x1x8xf32> to vector<2x8x8xf32>
    %126 = arith.addf %124, %125 : vector<2x8x8xf32>
    %cst_30 = arith.constant dense<0xFF800000> : vector<2x8xf32>
    %127 = vector.multi_reduction <maximumf>, %126, %cst_30 [2] : vector<2x8x8xf32> to vector<2x8xf32>
    %128 = vector.shape_cast %127 : vector<2x8xf32> to vector<2x8x1xf32>
    %129 = vector.broadcast %128 : vector<2x8x1xf32> to vector<2x8x8xf32>
    %130 = arith.subf %126, %129 : vector<2x8x8xf32>
    %131 = math.exp %130 : vector<2x8x8xf32>
    %cst_31 = arith.constant dense<0.000000e+00> : vector<2x8xf32>
    %132 = vector.multi_reduction <add>, %131, %cst_31 [2] : vector<2x8x8xf32> to vector<2x8xf32>
    %133 = vector.shape_cast %132 : vector<2x8xf32> to vector<2x8x1xf32>
    %134 = tpu.reciprocal %133 {approx = true} : vector<2x8x1xf32> -> vector<2x8x1xf32>
    %135 = vector.broadcast %134 : vector<2x8x1xf32> to vector<2x8x8xf32>
    %136 = arith.mulf %131, %135 : vector<2x8x8xf32>
    %137 = arith.truncf %136 : vector<2x8x8xf32> to vector<2x8x8xbf16>
    %138 = arith.truncf %119 : vector<2x8x8xf32> to vector<2x8x8xbf16>
    "tpu.trace_start"() <{level = 10 : i32, message = "bqk,bkd->bqd"}> : () -> ()
    %cst_32 = arith.constant dense<0.000000e+00> : vector<2x8x8xf32>
    %139 = tpu.matmul %137, %138, %cst_32 {dimension_numbers = #tpu.dot_dimension_numbers<[2], [1], [1], [2], [0, 0, 0, 1, 1, 2], [0], [0]>} : vector<2x8x8xbf16>, vector<2x8x8xbf16>, vector<2x8x8xf32> -> vector<2x8x8xf32>
    "tpu.trace_stop"() : () -> ()
    %140 = vector.shape_cast %139 : vector<2x8x8xf32> to vector<16x8xf32>
    %141 = tpu.concatenate %59, %86, %113, %140 in 1 : vector<16x8xf32>, vector<16x8xf32>, vector<16x8xf32>, vector<16x8xf32> -> vector<16x32xf32>
    %c0_33 = arith.constant 0 : index
    %c96 = arith.constant 96 : index
    %142 = vector.load %arg2[%c0_33, %c96] : memref<32x544xbf16, #tpu.memory_space<vmem>>, vector<32x32xbf16>
    %143 = arith.truncf %141 : vector<16x32xf32> to vector<16x32xbf16>
    %cst_34 = arith.constant dense<0.000000e+00> : vector<16x32xf32>
    %144 = tpu.matmul %143, %142, %cst_34 {dimension_numbers = #tpu.dot_dimension_numbers<[1], [0], [0], [1], [0, 0, 1, 1], [], []>} : vector<16x32xbf16>, vector<32x32xbf16>, vector<16x32xf32> -> vector<16x32xf32>
    %145 = vector.extract_strided_slice %0 {offsets = [3, 0], sizes = [1, 32], strides = [1, 1]} : vector<22x128xf32> to vector<1x32xf32>
    %146 = vector.broadcast %145 : vector<1x32xf32> to vector<16x32xf32>
    %147 = arith.addf %144, %146 : vector<16x32xf32>
    %148 = arith.addf %25, %147 : vector<16x32xf32>
    %149 = vector.extract_strided_slice %0 {offsets = [4, 0], sizes = [1, 32], strides = [1, 1]} : vector<22x128xf32> to vector<1x32xf32>
    %150 = vector.extract_strided_slice %0 {offsets = [5, 0], sizes = [1, 32], strides = [1, 1]} : vector<22x128xf32> to vector<1x32xf32>
    %cst_35 = arith.constant dense<0.000000e+00> : vector<16xf32>
    %151 = vector.multi_reduction <add>, %148, %cst_35 [1] : vector<16x32xf32> to vector<16xf32>
    %152 = vector.shape_cast %151 : vector<16xf32> to vector<16x1xf32>
    %cst_36 = arith.constant 3.200000e+01 : f32
    %153 = vector.broadcast %cst_36 : f32 to vector<16x1xf32>
    %154 = arith.divf %152, %153 : vector<16x1xf32>
    %155 = vector.broadcast %154 : vector<16x1xf32> to vector<16x32xf32>
    %156 = arith.subf %148, %155 : vector<16x32xf32>
    %157 = arith.mulf %156, %156 : vector<16x32xf32>
    %cst_37 = arith.constant dense<0.000000e+00> : vector<16xf32>
    %158 = vector.multi_reduction <add>, %157, %cst_37 [1] : vector<16x32xf32> to vector<16xf32>
    %159 = vector.shape_cast %158 : vector<16xf32> to vector<16x1xf32>
    %cst_38 = arith.constant 3.200000e+01 : f32
    %160 = vector.broadcast %cst_38 : f32 to vector<16x1xf32>
    %161 = arith.divf %159, %160 : vector<16x1xf32>
    %162 = vector.broadcast %154 : vector<16x1xf32> to vector<16x32xf32>
    %163 = arith.subf %148, %162 : vector<16x32xf32>
    %cst_39 = arith.constant 9.99999996E-13 : f32
    %164 = vector.broadcast %cst_39 : f32 to vector<16x1xf32>
    %165 = arith.addf %161, %164 : vector<16x1xf32>
    %166 = math.rsqrt %165 : vector<16x1xf32>
    %167 = vector.broadcast %166 : vector<16x1xf32> to vector<16x32xf32>
    %168 = arith.mulf %163, %167 : vector<16x32xf32>
    %169 = vector.broadcast %149 : vector<1x32xf32> to vector<16x32xf32>
    %170 = arith.mulf %168, %169 : vector<16x32xf32>
    %171 = vector.broadcast %150 : vector<1x32xf32> to vector<16x32xf32>
    %172 = arith.addf %170, %171 : vector<16x32xf32>
    %c0_40 = arith.constant 0 : index
    %c128 = arith.constant 128 : index
    %173 = vector.load %arg2[%c0_40, %c128] : memref<32x544xbf16, #tpu.memory_space<vmem>>, vector<32x64xbf16>
    %174 = arith.truncf %172 : vector<16x32xf32> to vector<16x32xbf16>
    %cst_41 = arith.constant dense<0.000000e+00> : vector<16x64xf32>
    %175 = tpu.matmul %174, %173, %cst_41 {dimension_numbers = #tpu.dot_dimension_numbers<[1], [0], [0], [1], [0, 0, 1, 1], [], []>} : vector<16x32xbf16>, vector<32x64xbf16>, vector<16x64xf32> -> vector<16x64xf32>
    %176 = vector.extract_strided_slice %0 {offsets = [6, 0], sizes = [1, 64], strides = [1, 1]} : vector<22x128xf32> to vector<1x64xf32>
    %177 = vector.broadcast %176 : vector<1x64xf32> to vector<16x64xf32>
    %178 = arith.addf %175, %177 : vector<16x64xf32>
    %179 = arith.mulf %178, %178 : vector<16x64xf32>
    %180 = arith.mulf %178, %179 : vector<16x64xf32>
    %cst_42 = arith.constant 4.471500e-02 : f32
    %181 = vector.broadcast %cst_42 : f32 to vector<16x64xf32>
    %182 = arith.mulf %181, %180 : vector<16x64xf32>
    %183 = arith.addf %178, %182 : vector<16x64xf32>
    %cst_43 = arith.constant 0.797884583 : f32
    %184 = vector.broadcast %cst_43 : f32 to vector<16x64xf32>
    %185 = arith.mulf %184, %183 : vector<16x64xf32>
    %186 = math.tanh %185 : vector<16x64xf32>
    %cst_44 = arith.constant 1.000000e+00 : f32
    %187 = vector.broadcast %cst_44 : f32 to vector<16x64xf32>
    %188 = arith.addf %187, %186 : vector<16x64xf32>
    %cst_45 = arith.constant 5.000000e-01 : f32
    %189 = vector.broadcast %cst_45 : f32 to vector<16x64xf32>
    %190 = arith.mulf %189, %188 : vector<16x64xf32>
    %191 = arith.mulf %178, %190 : vector<16x64xf32>
    %c0_46 = arith.constant 0 : index
    %c0_47 = arith.constant 0 : index
    %192 = vector.load %arg3[%c0_46, %c0_47] : memref<64x64xbf16, #tpu.memory_space<vmem>>, vector<64x32xbf16>
    %193 = arith.truncf %191 : vector<16x64xf32> to vector<16x64xbf16>
    %cst_48 = arith.constant dense<0.000000e+00> : vector<16x32xf32>
    %194 = tpu.matmul %193, %192, %cst_48 {dimension_numbers = #tpu.dot_dimension_numbers<[1], [0], [0], [1], [0, 0, 1, 1], [], []>} : vector<16x64xbf16>, vector<64x32xbf16>, vector<16x32xf32> -> vector<16x32xf32>
    %195 = vector.extract_strided_slice %0 {offsets = [7, 0], sizes = [1, 32], strides = [1, 1]} : vector<22x128xf32> to vector<1x32xf32>
    %196 = vector.broadcast %195 : vector<1x32xf32> to vector<16x32xf32>
    %197 = arith.addf %194, %196 : vector<16x32xf32>
    %198 = arith.addf %172, %197 : vector<16x32xf32>
    %199 = vector.extract_strided_slice %0 {offsets = [8, 0], sizes = [1, 32], strides = [1, 1]} : vector<22x128xf32> to vector<1x32xf32>
    %200 = vector.extract_strided_slice %0 {offsets = [9, 0], sizes = [1, 32], strides = [1, 1]} : vector<22x128xf32> to vector<1x32xf32>
    %cst_49 = arith.constant dense<0.000000e+00> : vector<16xf32>
    %201 = vector.multi_reduction <add>, %198, %cst_49 [1] : vector<16x32xf32> to vector<16xf32>
    %202 = vector.shape_cast %201 : vector<16xf32> to vector<16x1xf32>
    %cst_50 = arith.constant 3.200000e+01 : f32
    %203 = vector.broadcast %cst_50 : f32 to vector<16x1xf32>
    %204 = arith.divf %202, %203 : vector<16x1xf32>
    %205 = vector.broadcast %204 : vector<16x1xf32> to vector<16x32xf32>
    %206 = arith.subf %198, %205 : vector<16x32xf32>
    %207 = arith.mulf %206, %206 : vector<16x32xf32>
    %cst_51 = arith.constant dense<0.000000e+00> : vector<16xf32>
    %208 = vector.multi_reduction <add>, %207, %cst_51 [1] : vector<16x32xf32> to vector<16xf32>
    %209 = vector.shape_cast %208 : vector<16xf32> to vector<16x1xf32>
    %cst_52 = arith.constant 3.200000e+01 : f32
    %210 = vector.broadcast %cst_52 : f32 to vector<16x1xf32>
    %211 = arith.divf %209, %210 : vector<16x1xf32>
    %212 = vector.broadcast %204 : vector<16x1xf32> to vector<16x32xf32>
    %213 = arith.subf %198, %212 : vector<16x32xf32>
    %cst_53 = arith.constant 9.99999996E-13 : f32
    %214 = vector.broadcast %cst_53 : f32 to vector<16x1xf32>
    %215 = arith.addf %211, %214 : vector<16x1xf32>
    %216 = math.rsqrt %215 : vector<16x1xf32>
    %217 = vector.broadcast %216 : vector<16x1xf32> to vector<16x32xf32>
    %218 = arith.mulf %213, %217 : vector<16x32xf32>
    %219 = vector.broadcast %199 : vector<1x32xf32> to vector<16x32xf32>
    %220 = arith.mulf %218, %219 : vector<16x32xf32>
    %221 = vector.broadcast %200 : vector<1x32xf32> to vector<16x32xf32>
    %222 = arith.addf %220, %221 : vector<16x32xf32>
    %c0_54 = arith.constant 0 : index
    %c192 = arith.constant 192 : index
    %223 = vector.load %arg2[%c0_54, %c192] : memref<32x544xbf16, #tpu.memory_space<vmem>>, vector<32x96xbf16>
    %224 = arith.truncf %222 : vector<16x32xf32> to vector<16x32xbf16>
    %cst_55 = arith.constant dense<0.000000e+00> : vector<16x96xf32>
    %225 = tpu.matmul %224, %223, %cst_55 {dimension_numbers = #tpu.dot_dimension_numbers<[1], [0], [0], [1], [0, 0, 1, 1], [], []>} : vector<16x32xbf16>, vector<32x96xbf16>, vector<16x96xf32> -> vector<16x96xf32>
    %226 = vector.extract_strided_slice %0 {offsets = [10, 0], sizes = [1, 96], strides = [1, 1]} : vector<22x128xf32> to vector<1x96xf32>
    %227 = vector.broadcast %226 : vector<1x96xf32> to vector<16x96xf32>
    %228 = arith.addf %225, %227 : vector<16x96xf32>
    %229 = vector.extract_strided_slice %228 {offsets = [0, 0], sizes = [16, 8], strides = [1, 1]} : vector<16x96xf32> to vector<16x8xf32>
    %230 = vector.shape_cast %229 : vector<16x8xf32> to vector<2x8x8xf32>
    %231 = vector.extract_strided_slice %228 {offsets = [0, 32], sizes = [16, 8], strides = [1, 1]} : vector<16x96xf32> to vector<16x8xf32>
    %232 = vector.shape_cast %231 : vector<16x8xf32> to vector<2x8x8xf32>
    %233 = vector.extract_strided_slice %228 {offsets = [0, 64], sizes = [16, 8], strides = [1, 1]} : vector<16x96xf32> to vector<16x8xf32>
    %234 = vector.shape_cast %233 : vector<16x8xf32> to vector<2x8x8xf32>
    %235 = arith.truncf %230 : vector<2x8x8xf32> to vector<2x8x8xbf16>
    %236 = arith.truncf %232 : vector<2x8x8xf32> to vector<2x8x8xbf16>
    "tpu.trace_start"() <{level = 10 : i32, message = "bqd,bkd->bqk"}> : () -> ()
    %cst_56 = arith.constant dense<0.000000e+00> : vector<2x8x8xf32>
    %237 = tpu.matmul %235, %236, %cst_56 {dimension_numbers = #tpu.dot_dimension_numbers<[2], [2], [1], [1], [0, 0, 0, 1, 1, 1], [0], [0]>} : vector<2x8x8xbf16>, vector<2x8x8xbf16>, vector<2x8x8xf32> -> vector<2x8x8xf32>
    "tpu.trace_stop"() : () -> ()
    %cst_57 = arith.constant 0.353553385 : f32
    %238 = vector.broadcast %cst_57 : f32 to vector<2x8x8xf32>
    %239 = arith.mulf %237, %238 : vector<2x8x8xf32>
    %240 = vector.broadcast %26 : vector<2x1x8xf32> to vector<2x8x8xf32>
    %241 = arith.addf %239, %240 : vector<2x8x8xf32>
    %cst_58 = arith.constant dense<0xFF800000> : vector<2x8xf32>
    %242 = vector.multi_reduction <maximumf>, %241, %cst_58 [2] : vector<2x8x8xf32> to vector<2x8xf32>
    %243 = vector.shape_cast %242 : vector<2x8xf32> to vector<2x8x1xf32>
    %244 = vector.broadcast %243 : vector<2x8x1xf32> to vector<2x8x8xf32>
    %245 = arith.subf %241, %244 : vector<2x8x8xf32>
    %246 = math.exp %245 : vector<2x8x8xf32>
    %cst_59 = arith.constant dense<0.000000e+00> : vector<2x8xf32>
    %247 = vector.multi_reduction <add>, %246, %cst_59 [2] : vector<2x8x8xf32> to vector<2x8xf32>
    %248 = vector.shape_cast %247 : vector<2x8xf32> to vector<2x8x1xf32>
    %249 = tpu.reciprocal %248 {approx = true} : vector<2x8x1xf32> -> vector<2x8x1xf32>
    %250 = vector.broadcast %249 : vector<2x8x1xf32> to vector<2x8x8xf32>
    %251 = arith.mulf %246, %250 : vector<2x8x8xf32>
    %252 = arith.truncf %251 : vector<2x8x8xf32> to vector<2x8x8xbf16>
    %253 = arith.truncf %234 : vector<2x8x8xf32> to vector<2x8x8xbf16>
    "tpu.trace_start"() <{level = 10 : i32, message = "bqk,bkd->bqd"}> : () -> ()
    %cst_60 = arith.constant dense<0.000000e+00> : vector<2x8x8xf32>
    %254 = tpu.matmul %252, %253, %cst_60 {dimension_numbers = #tpu.dot_dimension_numbers<[2], [1], [1], [2], [0, 0, 0, 1, 1, 2], [0], [0]>} : vector<2x8x8xbf16>, vector<2x8x8xbf16>, vector<2x8x8xf32> -> vector<2x8x8xf32>
    "tpu.trace_stop"() : () -> ()
    %255 = vector.shape_cast %254 : vector<2x8x8xf32> to vector<16x8xf32>
    %256 = vector.extract_strided_slice %228 {offsets = [0, 8], sizes = [16, 8], strides = [1, 1]} : vector<16x96xf32> to vector<16x8xf32>
    %257 = vector.shape_cast %256 : vector<16x8xf32> to vector<2x8x8xf32>
    %258 = vector.extract_strided_slice %228 {offsets = [0, 40], sizes = [16, 8], strides = [1, 1]} : vector<16x96xf32> to vector<16x8xf32>
    %259 = vector.shape_cast %258 : vector<16x8xf32> to vector<2x8x8xf32>
    %260 = vector.extract_strided_slice %228 {offsets = [0, 72], sizes = [16, 8], strides = [1, 1]} : vector<16x96xf32> to vector<16x8xf32>
    %261 = vector.shape_cast %260 : vector<16x8xf32> to vector<2x8x8xf32>
    %262 = arith.truncf %257 : vector<2x8x8xf32> to vector<2x8x8xbf16>
    %263 = arith.truncf %259 : vector<2x8x8xf32> to vector<2x8x8xbf16>
    "tpu.trace_start"() <{level = 10 : i32, message = "bqd,bkd->bqk"}> : () -> ()
    %cst_61 = arith.constant dense<0.000000e+00> : vector<2x8x8xf32>
    %264 = tpu.matmul %262, %263, %cst_61 {dimension_numbers = #tpu.dot_dimension_numbers<[2], [2], [1], [1], [0, 0, 0, 1, 1, 1], [0], [0]>} : vector<2x8x8xbf16>, vector<2x8x8xbf16>, vector<2x8x8xf32> -> vector<2x8x8xf32>
    "tpu.trace_stop"() : () -> ()
    %cst_62 = arith.constant 0.353553385 : f32
    %265 = vector.broadcast %cst_62 : f32 to vector<2x8x8xf32>
    %266 = arith.mulf %264, %265 : vector<2x8x8xf32>
    %267 = vector.broadcast %26 : vector<2x1x8xf32> to vector<2x8x8xf32>
    %268 = arith.addf %266, %267 : vector<2x8x8xf32>
    %cst_63 = arith.constant dense<0xFF800000> : vector<2x8xf32>
    %269 = vector.multi_reduction <maximumf>, %268, %cst_63 [2] : vector<2x8x8xf32> to vector<2x8xf32>
    %270 = vector.shape_cast %269 : vector<2x8xf32> to vector<2x8x1xf32>
    %271 = vector.broadcast %270 : vector<2x8x1xf32> to vector<2x8x8xf32>
    %272 = arith.subf %268, %271 : vector<2x8x8xf32>
    %273 = math.exp %272 : vector<2x8x8xf32>
    %cst_64 = arith.constant dense<0.000000e+00> : vector<2x8xf32>
    %274 = vector.multi_reduction <add>, %273, %cst_64 [2] : vector<2x8x8xf32> to vector<2x8xf32>
    %275 = vector.shape_cast %274 : vector<2x8xf32> to vector<2x8x1xf32>
    %276 = tpu.reciprocal %275 {approx = true} : vector<2x8x1xf32> -> vector<2x8x1xf32>
    %277 = vector.broadcast %276 : vector<2x8x1xf32> to vector<2x8x8xf32>
    %278 = arith.mulf %273, %277 : vector<2x8x8xf32>
    %279 = arith.truncf %278 : vector<2x8x8xf32> to vector<2x8x8xbf16>
    %280 = arith.truncf %261 : vector<2x8x8xf32> to vector<2x8x8xbf16>
    "tpu.trace_start"() <{level = 10 : i32, message = "bqk,bkd->bqd"}> : () -> ()
    %cst_65 = arith.constant dense<0.000000e+00> : vector<2x8x8xf32>
    %281 = tpu.matmul %279, %280, %cst_65 {dimension_numbers = #tpu.dot_dimension_numbers<[2], [1], [1], [2], [0, 0, 0, 1, 1, 2], [0], [0]>} : vector<2x8x8xbf16>, vector<2x8x8xbf16>, vector<2x8x8xf32> -> vector<2x8x8xf32>
    "tpu.trace_stop"() : () -> ()
    %282 = vector.shape_cast %281 : vector<2x8x8xf32> to vector<16x8xf32>
    %283 = vector.extract_strided_slice %228 {offsets = [0, 16], sizes = [16, 8], strides = [1, 1]} : vector<16x96xf32> to vector<16x8xf32>
    %284 = vector.shape_cast %283 : vector<16x8xf32> to vector<2x8x8xf32>
    %285 = vector.extract_strided_slice %228 {offsets = [0, 48], sizes = [16, 8], strides = [1, 1]} : vector<16x96xf32> to vector<16x8xf32>
    %286 = vector.shape_cast %285 : vector<16x8xf32> to vector<2x8x8xf32>
    %287 = vector.extract_strided_slice %228 {offsets = [0, 80], sizes = [16, 8], strides = [1, 1]} : vector<16x96xf32> to vector<16x8xf32>
    %288 = vector.shape_cast %287 : vector<16x8xf32> to vector<2x8x8xf32>
    %289 = arith.truncf %284 : vector<2x8x8xf32> to vector<2x8x8xbf16>
    %290 = arith.truncf %286 : vector<2x8x8xf32> to vector<2x8x8xbf16>
    "tpu.trace_start"() <{level = 10 : i32, message = "bqd,bkd->bqk"}> : () -> ()
    %cst_66 = arith.constant dense<0.000000e+00> : vector<2x8x8xf32>
    %291 = tpu.matmul %289, %290, %cst_66 {dimension_numbers = #tpu.dot_dimension_numbers<[2], [2], [1], [1], [0, 0, 0, 1, 1, 1], [0], [0]>} : vector<2x8x8xbf16>, vector<2x8x8xbf16>, vector<2x8x8xf32> -> vector<2x8x8xf32>
    "tpu.trace_stop"() : () -> ()
    %cst_67 = arith.constant 0.353553385 : f32
    %292 = vector.broadcast %cst_67 : f32 to vector<2x8x8xf32>
    %293 = arith.mulf %291, %292 : vector<2x8x8xf32>
    %294 = vector.broadcast %26 : vector<2x1x8xf32> to vector<2x8x8xf32>
    %295 = arith.addf %293, %294 : vector<2x8x8xf32>
    %cst_68 = arith.constant dense<0xFF800000> : vector<2x8xf32>
    %296 = vector.multi_reduction <maximumf>, %295, %cst_68 [2] : vector<2x8x8xf32> to vector<2x8xf32>
    %297 = vector.shape_cast %296 : vector<2x8xf32> to vector<2x8x1xf32>
    %298 = vector.broadcast %297 : vector<2x8x1xf32> to vector<2x8x8xf32>
    %299 = arith.subf %295, %298 : vector<2x8x8xf32>
    %300 = math.exp %299 : vector<2x8x8xf32>
    %cst_69 = arith.constant dense<0.000000e+00> : vector<2x8xf32>
    %301 = vector.multi_reduction <add>, %300, %cst_69 [2] : vector<2x8x8xf32> to vector<2x8xf32>
    %302 = vector.shape_cast %301 : vector<2x8xf32> to vector<2x8x1xf32>
    %303 = tpu.reciprocal %302 {approx = true} : vector<2x8x1xf32> -> vector<2x8x1xf32>
    %304 = vector.broadcast %303 : vector<2x8x1xf32> to vector<2x8x8xf32>
    %305 = arith.mulf %300, %304 : vector<2x8x8xf32>
    %306 = arith.truncf %305 : vector<2x8x8xf32> to vector<2x8x8xbf16>
    %307 = arith.truncf %288 : vector<2x8x8xf32> to vector<2x8x8xbf16>
    "tpu.trace_start"() <{level = 10 : i32, message = "bqk,bkd->bqd"}> : () -> ()
    %cst_70 = arith.constant dense<0.000000e+00> : vector<2x8x8xf32>
    %308 = tpu.matmul %306, %307, %cst_70 {dimension_numbers = #tpu.dot_dimension_numbers<[2], [1], [1], [2], [0, 0, 0, 1, 1, 2], [0], [0]>} : vector<2x8x8xbf16>, vector<2x8x8xbf16>, vector<2x8x8xf32> -> vector<2x8x8xf32>
    "tpu.trace_stop"() : () -> ()
    %309 = vector.shape_cast %308 : vector<2x8x8xf32> to vector<16x8xf32>
    %310 = vector.extract_strided_slice %228 {offsets = [0, 24], sizes = [16, 8], strides = [1, 1]} : vector<16x96xf32> to vector<16x8xf32>
    %311 = vector.shape_cast %310 : vector<16x8xf32> to vector<2x8x8xf32>
    %312 = vector.extract_strided_slice %228 {offsets = [0, 56], sizes = [16, 8], strides = [1, 1]} : vector<16x96xf32> to vector<16x8xf32>
    %313 = vector.shape_cast %312 : vector<16x8xf32> to vector<2x8x8xf32>
    %314 = vector.extract_strided_slice %228 {offsets = [0, 88], sizes = [16, 8], strides = [1, 1]} : vector<16x96xf32> to vector<16x8xf32>
    %315 = vector.shape_cast %314 : vector<16x8xf32> to vector<2x8x8xf32>
    %316 = arith.truncf %311 : vector<2x8x8xf32> to vector<2x8x8xbf16>
    %317 = arith.truncf %313 : vector<2x8x8xf32> to vector<2x8x8xbf16>
    "tpu.trace_start"() <{level = 10 : i32, message = "bqd,bkd->bqk"}> : () -> ()
    %cst_71 = arith.constant dense<0.000000e+00> : vector<2x8x8xf32>
    %318 = tpu.matmul %316, %317, %cst_71 {dimension_numbers = #tpu.dot_dimension_numbers<[2], [2], [1], [1], [0, 0, 0, 1, 1, 1], [0], [0]>} : vector<2x8x8xbf16>, vector<2x8x8xbf16>, vector<2x8x8xf32> -> vector<2x8x8xf32>
    "tpu.trace_stop"() : () -> ()
    %cst_72 = arith.constant 0.353553385 : f32
    %319 = vector.broadcast %cst_72 : f32 to vector<2x8x8xf32>
    %320 = arith.mulf %318, %319 : vector<2x8x8xf32>
    %321 = vector.broadcast %26 : vector<2x1x8xf32> to vector<2x8x8xf32>
    %322 = arith.addf %320, %321 : vector<2x8x8xf32>
    %cst_73 = arith.constant dense<0xFF800000> : vector<2x8xf32>
    %323 = vector.multi_reduction <maximumf>, %322, %cst_73 [2] : vector<2x8x8xf32> to vector<2x8xf32>
    %324 = vector.shape_cast %323 : vector<2x8xf32> to vector<2x8x1xf32>
    %325 = vector.broadcast %324 : vector<2x8x1xf32> to vector<2x8x8xf32>
    %326 = arith.subf %322, %325 : vector<2x8x8xf32>
    %327 = math.exp %326 : vector<2x8x8xf32>
    %cst_74 = arith.constant dense<0.000000e+00> : vector<2x8xf32>
    %328 = vector.multi_reduction <add>, %327, %cst_74 [2] : vector<2x8x8xf32> to vector<2x8xf32>
    %329 = vector.shape_cast %328 : vector<2x8xf32> to vector<2x8x1xf32>
    %330 = tpu.reciprocal %329 {approx = true} : vector<2x8x1xf32> -> vector<2x8x1xf32>
    %331 = vector.broadcast %330 : vector<2x8x1xf32> to vector<2x8x8xf32>
    %332 = arith.mulf %327, %331 : vector<2x8x8xf32>
    %333 = arith.truncf %332 : vector<2x8x8xf32> to vector<2x8x8xbf16>
    %334 = arith.truncf %315 : vector<2x8x8xf32> to vector<2x8x8xbf16>
    "tpu.trace_start"() <{level = 10 : i32, message = "bqk,bkd->bqd"}> : () -> ()
    %cst_75 = arith.constant dense<0.000000e+00> : vector<2x8x8xf32>
    %335 = tpu.matmul %333, %334, %cst_75 {dimension_numbers = #tpu.dot_dimension_numbers<[2], [1], [1], [2], [0, 0, 0, 1, 1, 2], [0], [0]>} : vector<2x8x8xbf16>, vector<2x8x8xbf16>, vector<2x8x8xf32> -> vector<2x8x8xf32>
    "tpu.trace_stop"() : () -> ()
    %336 = vector.shape_cast %335 : vector<2x8x8xf32> to vector<16x8xf32>
    %337 = tpu.concatenate %255, %282, %309, %336 in 1 : vector<16x8xf32>, vector<16x8xf32>, vector<16x8xf32>, vector<16x8xf32> -> vector<16x32xf32>
    %c0_76 = arith.constant 0 : index
    %c288 = arith.constant 288 : index
    %338 = vector.load %arg2[%c0_76, %c288] : memref<32x544xbf16, #tpu.memory_space<vmem>>, vector<32x32xbf16>
    %339 = arith.truncf %337 : vector<16x32xf32> to vector<16x32xbf16>
    %cst_77 = arith.constant dense<0.000000e+00> : vector<16x32xf32>
    %340 = tpu.matmul %339, %338, %cst_77 {dimension_numbers = #tpu.dot_dimension_numbers<[1], [0], [0], [1], [0, 0, 1, 1], [], []>} : vector<16x32xbf16>, vector<32x32xbf16>, vector<16x32xf32> -> vector<16x32xf32>
    %341 = vector.extract_strided_slice %0 {offsets = [11, 0], sizes = [1, 32], strides = [1, 1]} : vector<22x128xf32> to vector<1x32xf32>
    %342 = vector.broadcast %341 : vector<1x32xf32> to vector<16x32xf32>
    %343 = arith.addf %340, %342 : vector<16x32xf32>
    %344 = arith.addf %222, %343 : vector<16x32xf32>
    %345 = vector.extract_strided_slice %0 {offsets = [12, 0], sizes = [1, 32], strides = [1, 1]} : vector<22x128xf32> to vector<1x32xf32>
    %346 = vector.extract_strided_slice %0 {offsets = [13, 0], sizes = [1, 32], strides = [1, 1]} : vector<22x128xf32> to vector<1x32xf32>
    %cst_78 = arith.constant dense<0.000000e+00> : vector<16xf32>
    %347 = vector.multi_reduction <add>, %344, %cst_78 [1] : vector<16x32xf32> to vector<16xf32>
    %348 = vector.shape_cast %347 : vector<16xf32> to vector<16x1xf32>
    %cst_79 = arith.constant 3.200000e+01 : f32
    %349 = vector.broadcast %cst_79 : f32 to vector<16x1xf32>
    %350 = arith.divf %348, %349 : vector<16x1xf32>
    %351 = vector.broadcast %350 : vector<16x1xf32> to vector<16x32xf32>
    %352 = arith.subf %344, %351 : vector<16x32xf32>
    %353 = arith.mulf %352, %352 : vector<16x32xf32>
    %cst_80 = arith.constant dense<0.000000e+00> : vector<16xf32>
    %354 = vector.multi_reduction <add>, %353, %cst_80 [1] : vector<16x32xf32> to vector<16xf32>
    %355 = vector.shape_cast %354 : vector<16xf32> to vector<16x1xf32>
    %cst_81 = arith.constant 3.200000e+01 : f32
    %356 = vector.broadcast %cst_81 : f32 to vector<16x1xf32>
    %357 = arith.divf %355, %356 : vector<16x1xf32>
    %358 = vector.broadcast %350 : vector<16x1xf32> to vector<16x32xf32>
    %359 = arith.subf %344, %358 : vector<16x32xf32>
    %cst_82 = arith.constant 9.99999996E-13 : f32
    %360 = vector.broadcast %cst_82 : f32 to vector<16x1xf32>
    %361 = arith.addf %357, %360 : vector<16x1xf32>
    %362 = math.rsqrt %361 : vector<16x1xf32>
    %363 = vector.broadcast %362 : vector<16x1xf32> to vector<16x32xf32>
    %364 = arith.mulf %359, %363 : vector<16x32xf32>
    %365 = vector.broadcast %345 : vector<1x32xf32> to vector<16x32xf32>
    %366 = arith.mulf %364, %365 : vector<16x32xf32>
    %367 = vector.broadcast %346 : vector<1x32xf32> to vector<16x32xf32>
    %368 = arith.addf %366, %367 : vector<16x32xf32>
    %c0_83 = arith.constant 0 : index
    %c320 = arith.constant 320 : index
    %369 = vector.load %arg2[%c0_83, %c320] : memref<32x544xbf16, #tpu.memory_space<vmem>>, vector<32x64xbf16>
    %370 = arith.truncf %368 : vector<16x32xf32> to vector<16x32xbf16>
    %cst_84 = arith.constant dense<0.000000e+00> : vector<16x64xf32>
    %371 = tpu.matmul %370, %369, %cst_84 {dimension_numbers = #tpu.dot_dimension_numbers<[1], [0], [0], [1], [0, 0, 1, 1], [], []>} : vector<16x32xbf16>, vector<32x64xbf16>, vector<16x64xf32> -> vector<16x64xf32>
    %372 = vector.extract_strided_slice %0 {offsets = [14, 0], sizes = [1, 64], strides = [1, 1]} : vector<22x128xf32> to vector<1x64xf32>
    %373 = vector.broadcast %372 : vector<1x64xf32> to vector<16x64xf32>
    %374 = arith.addf %371, %373 : vector<16x64xf32>
    %375 = arith.mulf %374, %374 : vector<16x64xf32>
    %376 = arith.mulf %374, %375 : vector<16x64xf32>
    %cst_85 = arith.constant 4.471500e-02 : f32
    %377 = vector.broadcast %cst_85 : f32 to vector<16x64xf32>
    %378 = arith.mulf %377, %376 : vector<16x64xf32>
    %379 = arith.addf %374, %378 : vector<16x64xf32>
    %cst_86 = arith.constant 0.797884583 : f32
    %380 = vector.broadcast %cst_86 : f32 to vector<16x64xf32>
    %381 = arith.mulf %380, %379 : vector<16x64xf32>
    %382 = math.tanh %381 : vector<16x64xf32>
    %cst_87 = arith.constant 1.000000e+00 : f32
    %383 = vector.broadcast %cst_87 : f32 to vector<16x64xf32>
    %384 = arith.addf %383, %382 : vector<16x64xf32>
    %cst_88 = arith.constant 5.000000e-01 : f32
    %385 = vector.broadcast %cst_88 : f32 to vector<16x64xf32>
    %386 = arith.mulf %385, %384 : vector<16x64xf32>
    %387 = arith.mulf %374, %386 : vector<16x64xf32>
    %c0_89 = arith.constant 0 : index
    %c32 = arith.constant 32 : index
    %388 = vector.load %arg3[%c0_89, %c32] : memref<64x64xbf16, #tpu.memory_space<vmem>>, vector<64x32xbf16>
    %389 = arith.truncf %387 : vector<16x64xf32> to vector<16x64xbf16>
    %cst_90 = arith.constant dense<0.000000e+00> : vector<16x32xf32>
    %390 = tpu.matmul %389, %388, %cst_90 {dimension_numbers = #tpu.dot_dimension_numbers<[1], [0], [0], [1], [0, 0, 1, 1], [], []>} : vector<16x64xbf16>, vector<64x32xbf16>, vector<16x32xf32> -> vector<16x32xf32>
    %391 = vector.extract_strided_slice %0 {offsets = [15, 0], sizes = [1, 32], strides = [1, 1]} : vector<22x128xf32> to vector<1x32xf32>
    %392 = vector.broadcast %391 : vector<1x32xf32> to vector<16x32xf32>
    %393 = arith.addf %390, %392 : vector<16x32xf32>
    %394 = arith.addf %368, %393 : vector<16x32xf32>
    %395 = vector.extract_strided_slice %0 {offsets = [16, 0], sizes = [1, 32], strides = [1, 1]} : vector<22x128xf32> to vector<1x32xf32>
    %396 = vector.extract_strided_slice %0 {offsets = [17, 0], sizes = [1, 32], strides = [1, 1]} : vector<22x128xf32> to vector<1x32xf32>
    %cst_91 = arith.constant dense<0.000000e+00> : vector<16xf32>
    %397 = vector.multi_reduction <add>, %394, %cst_91 [1] : vector<16x32xf32> to vector<16xf32>
    %398 = vector.shape_cast %397 : vector<16xf32> to vector<16x1xf32>
    %cst_92 = arith.constant 3.200000e+01 : f32
    %399 = vector.broadcast %cst_92 : f32 to vector<16x1xf32>
    %400 = arith.divf %398, %399 : vector<16x1xf32>
    %401 = vector.broadcast %400 : vector<16x1xf32> to vector<16x32xf32>
    %402 = arith.subf %394, %401 : vector<16x32xf32>
    %403 = arith.mulf %402, %402 : vector<16x32xf32>
    %cst_93 = arith.constant dense<0.000000e+00> : vector<16xf32>
    %404 = vector.multi_reduction <add>, %403, %cst_93 [1] : vector<16x32xf32> to vector<16xf32>
    %405 = vector.shape_cast %404 : vector<16xf32> to vector<16x1xf32>
    %cst_94 = arith.constant 3.200000e+01 : f32
    %406 = vector.broadcast %cst_94 : f32 to vector<16x1xf32>
    %407 = arith.divf %405, %406 : vector<16x1xf32>
    %408 = vector.broadcast %400 : vector<16x1xf32> to vector<16x32xf32>
    %409 = arith.subf %394, %408 : vector<16x32xf32>
    %cst_95 = arith.constant 9.99999996E-13 : f32
    %410 = vector.broadcast %cst_95 : f32 to vector<16x1xf32>
    %411 = arith.addf %407, %410 : vector<16x1xf32>
    %412 = math.rsqrt %411 : vector<16x1xf32>
    %413 = vector.broadcast %412 : vector<16x1xf32> to vector<16x32xf32>
    %414 = arith.mulf %409, %413 : vector<16x32xf32>
    %415 = vector.broadcast %395 : vector<1x32xf32> to vector<16x32xf32>
    %416 = arith.mulf %414, %415 : vector<16x32xf32>
    %417 = vector.broadcast %396 : vector<1x32xf32> to vector<16x32xf32>
    %418 = arith.addf %416, %417 : vector<16x32xf32>
    %c0_96 = arith.constant 0 : index
    %c384 = arith.constant 384 : index
    %419 = vector.load %arg2[%c0_96, %c384] : memref<32x544xbf16, #tpu.memory_space<vmem>>, vector<32x32xbf16>
    %420 = arith.truncf %418 : vector<16x32xf32> to vector<16x32xbf16>
    %cst_97 = arith.constant dense<0.000000e+00> : vector<16x32xf32>
    %421 = tpu.matmul %420, %419, %cst_97 {dimension_numbers = #tpu.dot_dimension_numbers<[1], [0], [0], [1], [0, 0, 1, 1], [], []>} : vector<16x32xbf16>, vector<32x32xbf16>, vector<16x32xf32> -> vector<16x32xf32>
    %422 = vector.extract_strided_slice %0 {offsets = [18, 0], sizes = [1, 32], strides = [1, 1]} : vector<22x128xf32> to vector<1x32xf32>
    %423 = vector.broadcast %422 : vector<1x32xf32> to vector<16x32xf32>
    %424 = arith.addf %421, %423 : vector<16x32xf32>
    %425 = arith.mulf %424, %424 : vector<16x32xf32>
    %426 = arith.mulf %424, %425 : vector<16x32xf32>
    %cst_98 = arith.constant 4.471500e-02 : f32
    %427 = vector.broadcast %cst_98 : f32 to vector<16x32xf32>
    %428 = arith.mulf %427, %426 : vector<16x32xf32>
    %429 = arith.addf %424, %428 : vector<16x32xf32>
    %cst_99 = arith.constant 0.797884583 : f32
    %430 = vector.broadcast %cst_99 : f32 to vector<16x32xf32>
    %431 = arith.mulf %430, %429 : vector<16x32xf32>
    %432 = math.tanh %431 : vector<16x32xf32>
    %cst_100 = arith.constant 1.000000e+00 : f32
    %433 = vector.broadcast %cst_100 : f32 to vector<16x32xf32>
    %434 = arith.addf %433, %432 : vector<16x32xf32>
    %cst_101 = arith.constant 5.000000e-01 : f32
    %435 = vector.broadcast %cst_101 : f32 to vector<16x32xf32>
    %436 = arith.mulf %435, %434 : vector<16x32xf32>
    %437 = arith.mulf %424, %436 : vector<16x32xf32>
    %438 = vector.extract_strided_slice %0 {offsets = [19, 0], sizes = [1, 32], strides = [1, 1]} : vector<22x128xf32> to vector<1x32xf32>
    %439 = vector.extract_strided_slice %0 {offsets = [20, 0], sizes = [1, 32], strides = [1, 1]} : vector<22x128xf32> to vector<1x32xf32>
    %cst_102 = arith.constant dense<0.000000e+00> : vector<16xf32>
    %440 = vector.multi_reduction <add>, %437, %cst_102 [1] : vector<16x32xf32> to vector<16xf32>
    %441 = vector.shape_cast %440 : vector<16xf32> to vector<16x1xf32>
    %cst_103 = arith.constant 3.200000e+01 : f32
    %442 = vector.broadcast %cst_103 : f32 to vector<16x1xf32>
    %443 = arith.divf %441, %442 : vector<16x1xf32>
    %444 = vector.broadcast %443 : vector<16x1xf32> to vector<16x32xf32>
    %445 = arith.subf %437, %444 : vector<16x32xf32>
    %446 = arith.mulf %445, %445 : vector<16x32xf32>
    %cst_104 = arith.constant dense<0.000000e+00> : vector<16xf32>
    %447 = vector.multi_reduction <add>, %446, %cst_104 [1] : vector<16x32xf32> to vector<16xf32>
    %448 = vector.shape_cast %447 : vector<16xf32> to vector<16x1xf32>
    %cst_105 = arith.constant 3.200000e+01 : f32
    %449 = vector.broadcast %cst_105 : f32 to vector<16x1xf32>
    %450 = arith.divf %448, %449 : vector<16x1xf32>
    %451 = vector.broadcast %443 : vector<16x1xf32> to vector<16x32xf32>
    %452 = arith.subf %437, %451 : vector<16x32xf32>
    %cst_106 = arith.constant 9.99999996E-13 : f32
    %453 = vector.broadcast %cst_106 : f32 to vector<16x1xf32>
    %454 = arith.addf %450, %453 : vector<16x1xf32>
    %455 = math.rsqrt %454 : vector<16x1xf32>
    %456 = vector.broadcast %455 : vector<16x1xf32> to vector<16x32xf32>
    %457 = arith.mulf %452, %456 : vector<16x32xf32>
    %458 = vector.broadcast %438 : vector<1x32xf32> to vector<16x32xf32>
    %459 = arith.mulf %457, %458 : vector<16x32xf32>
    %460 = vector.broadcast %439 : vector<1x32xf32> to vector<16x32xf32>
    %461 = arith.addf %459, %460 : vector<16x32xf32>
    %c0_107 = arith.constant 0 : index
    %c416 = arith.constant 416 : index
    %462 = vector.load %arg2[%c0_107, %c416] : memref<32x544xbf16, #tpu.memory_space<vmem>>, vector<32x128xbf16>
    %463 = arith.truncf %461 : vector<16x32xf32> to vector<16x32xbf16>
    %cst_108 = arith.constant dense<0.000000e+00> : vector<16x128xf32>
    %464 = tpu.matmul %463, %462, %cst_108 {dimension_numbers = #tpu.dot_dimension_numbers<[1], [0], [0], [1], [0, 0, 1, 1], [], []>} : vector<16x32xbf16>, vector<32x128xbf16>, vector<16x128xf32> -> vector<16x128xf32>
    %465 = vector.extract_strided_slice %0 {offsets = [21, 0], sizes = [1, 128], strides = [1, 1]} : vector<22x128xf32> to vector<1x128xf32>
    %466 = vector.broadcast %465 : vector<1x128xf32> to vector<16x128xf32>
    %467 = arith.addf %464, %466 : vector<16x128xf32>
    %c0_109 = arith.constant 0 : index
    %c0_110 = arith.constant 0 : index
    %468 = vector.load %arg5[%c0_109, %c0_110] : memref<16x128xf32, #tpu.memory_space<vmem>>, vector<16x128xf32>
    tpu.vector_store %arg5[%c0_109, %c0_110], %467 {strides = array<i32>} : memref<16x128xf32, #tpu.memory_space<vmem>>, vector<16x128xf32>,
    return
  }
}

</mosaic_0001>

<bundles_post_ra>
// kernel: bert_mlm_forward.1
= control target key start
LH: loop header
LB: loop body
LE: loop exit
PB: predicated region body
PF: predicated region fallthrough
CT: control target
= control target key end

     0   :  { %vm27_vm0 = vcmask 261120   ;;  %s2807_s0 = inlined_call_operand.vmem [shape: f32[16,32], index: 0, kind: input, shape index: {}]   ;;  %s2808_s1 = inlined_call_operand.vmem [shape: f32[2,1,8], index: 1, kind: input, shape index: {}]   ;;  %s2809_s2 = inlined_call_operand.vmem [shape: bf16[32,544], index: 2, kind: input, shape index: {}]   ;;  %s2810_s3 = inlined_call_operand.vmem [shape: bf16[64,64], index: 3, kind: input, shape index: {}]   ;;  %s2811_s4 = inlined_call_operand.vmem [shape: f32[22,128], index: 4, kind: input, shape index: {}]   ;;  %s2812_s5 = inlined_call_operand.hbm [shape: f32[16,128], index: 5, kind: output, shape index: {}]  }
   0x1   :  { %v25_v0 = vld [vmem:[%s2807_s0] sm:$0xff] }
   0x2   :  { %v28_v1 = vsel %vm27_vm0, %v25_v0, 0.0 }
   0x3   :  { %10 = vsyncpa [#allocation3], 0  ;;  %29 = vadd.xlane.f32.xlu0 %v28_v1  ;;  %v26_v2 = vld [vmem:[%s2807_s0 + $0x8] sm:$0xff]  ;;  %v2200_v4 = vmov 32.0   ;;  %v1995_v22 = vld [vmem:[%s2809_s2 + $0x38] sm:$0xf0] }
   0x4   :  { %v31_v3 = vsel %vm27_vm0, %v26_v2, 0.0  ;;  %2070 = vrcp.f32 %v2200_v4  ;;  %v1854_v21 = vld [vmem:[%s2809_s2 + $0x28] sm:$0xf]  ;;  %v1850_v24 = vld [vmem:[%s2809_s2] sm:$0xf]  ;;  %s2201_s6 = smov 88  }
   0x5   :  { %v1855_v23 = vor.u32 %v1995_v22, %v1854_v21  ;;  %v1994_v25 = vld [vmem:[%s2809_s2 + $0x10] sm:$0xf0]  ;;  %v2279_v44 = vld [vmem:[%s2811_s4] sm:$0xff]  ;;  %s2202_s7 = smov 96   ;;  %s2203_s8 = smov 80   ;;  %vm129_vm8 = vcmask 64512  }
   0x6   :  { %v1851_v27 = vor.u32 %v1994_v25, %v1850_v24  ;;  %v79_v47 = vperm.slane %v2279_v44, 0  ;;  %v82_v52 = vperm.slane %v2279_v44, 1  ;;  %v92_v57 = vperm.slane %v2279_v44, 2  ;;  %s2204_s9 = smov 112   ;;  %s2205_s10 = smov 72  }
   0x7   :  { %114 = vmatpush.bf16.msra.mxu0 %v1855_v23  ;;  %s2206_s11 = smov 120   ;;  %s2207_s12 = smov 104   ;;  %vm212_vm9 = vcmask 1043456   ;;  %vm624_vm10 = vcmask 130048   ;;  %vm627_vm11 = vcmask 195584  }
   0x8   :  { %s2208_s17 = smov 64   ;;  %s2209_s18 = smov 56  }
   0x9   :  { %s2210_s19 = smov 48   ;;  %s2211_s20 = smov 40  }
   0xa   :  { %v2071_v5 = vpop.eup %2070  ;;  %s2212_s24 = smov 32   ;;  %s2213_s25 = smov 8  }
   0xb   :  { %32 = vadd.xlane.f32.xlu0 %v31_v3  ;;  %v35_v6 = vmul.f32 32.0, %v2071_v5  ;;  %vm39_vm1 = vweird.f32 %v2071_v5  ;;  %115 = vmatpush.bf16.msra.mxu0 %v1851_v27  ;;  %v2342_v27 = vld [vmem:[%s2808_s1] ss:$0 sm:$0xff]  ;;  %s2214_s26 = smov 16   ;;  %s2215_s13 = smov 24  }
   0xc   :  { %s1836_s22 = sshll.u32 %s2812_s5, 4  ;;  %s2217_s23 = smov 128   ;;  %s1837_s22 = int_to_ptr.hbm [resolvable:$true] %s1836_s22 }
   0xd   :  { %v36_v7 = vsub.f32 1.0, %v35_v6 }
   0xf   :  { %v37_v8 = vmul.f32 %v2071_v5, %v36_v7 }
  0x11   :  { %v38_v9 = vadd.f32 %v2071_v5, %v37_v8 }
  0x13   :  { %v2256_v10 = vsel %vm39_vm1, %v2071_v5, %v38_v9 }
  0x76   :  { %v30_v11 = vpop.xlane.xlu0 %29 }
  0x77   :  { %v41_v12 = vmul.f32 %v2256_v10, %v30_v11 }
  0x79   :  { %v43_v13 = vsub.f32 %v25_v0, %v41_v12 }
  0x7b   :  { %v45_v14 = vmul.f32 %v43_v13, %v43_v13 }
  0x7d   :  { %v47_v15 = vsel %vm27_vm0, %v45_v14, 0.0 }
  0x7e   :  { %48 = vadd.xlane.f32.xlu1 %v47_v15  ;;  %v33_v16 = vpop.xlane.xlu0 %32 }
  0x7f   :  { %v42_v17 = vmul.f32 %v2256_v10, %v33_v16 }
  0x81   :  { %v44_v18 = vsub.f32 %v26_v2, %v42_v17 }
  0x83   :  { %v46_v19 = vmul.f32 %v44_v18, %v44_v18 }
  0x85   :  { %v50_v20 = vsel %vm27_vm0, %v46_v19, 0.0 }
  0x86   :  { %51 = vadd.xlane.f32.xlu1 %v50_v20 }
  0xf1   :  { %v49_v26 = vpop.xlane.xlu1 %48 }
  0xf2   :  { %v53_v28 = vmul.f32 %v49_v26, %v2256_v10 }
  0xf4   :  { %v55_v29 = vadd.f32 1e-12, %v53_v28 }
  0xf6   :  { %2072 = vrsqrt.f32 %v55_v29  ;;  %vm63_vm3 = vweird.f32 %v55_v29 }
  0xf9   :  { %v52_v30 = vpop.xlane.xlu1 %51 }
  0xfa   :  { %v54_v31 = vmul.f32 %v52_v30, %v2256_v10 }
  0xfc   :  { %v2073_v32 = vpop.eup %2072  ;;  %v56_v33 = vadd.f32 1e-12, %v54_v31 }
  0xfd   :  { %v58_v34 = vmul.f32 %v2073_v32, %v55_v29  ;;  %vm64_vm2 = vweird.f32 %v2073_v32 }
  0xfe   :  { %2074 = vrsqrt.f32 %v56_v33  ;;  %vm65_vm4 = vmor %vm63_vm3, %vm64_vm2  ;;  %vm73_vm6 = vweird.f32 %v56_v33  ;;  %vm808_vm3 = vcmask 523264  }
  0xff   :  { %v59_v35 = vmul.f32 %v2073_v32, %v58_v34 }
 0x101   :  { %v60_v36 = vmul.f32 0.5, %v59_v35 }
 0x103   :  { %v61_v37 = vsub.f32 1.5, %v60_v36 }
 0x104   :  { %v2075_v38 = vpop.eup %2074 }
 0x105   :  { %v62_v39 = vmul.f32 %v2073_v32, %v61_v37  ;;  %v68_v40 = vmul.f32 %v2075_v38, %v56_v33  ;;  %vm74_vm5 = vweird.f32 %v2075_v38  ;;  %v2349_v33 = vld [vmem:[%s2808_s1 + $0x1] ss:$0 sm:$0xff] }
 0x106   :  { %vm75_vm7 = vmor %vm73_vm6, %vm74_vm5 }
 0x107   :  { %v69_v41 = vmul.f32 %v2075_v38, %v68_v40  ;;  %v66_v42 = vsel %vm65_vm4, %v2073_v32, %v62_v39 }
 0x108   :  { %v77_v46 = vmul.f32 %v66_v42, %v43_v13 }
 0x109   :  { %v70_v43 = vmul.f32 0.5, %v69_v41 }
 0x10a   :  { %v80_v51 = vmul.f32 %v79_v47, %v77_v46 }
 0x10b   :  { %v71_v45 = vsub.f32 1.5, %v70_v43 }
 0x10c   :  { %v2283_v54 = vadd.f32 %v82_v52, %v80_v51 }
 0x10d   :  { %v72_v48 = vmul.f32 %v2075_v38, %v71_v45 }
 0x10f   :  { %v76_v49 = vsel %vm75_vm7, %v2075_v38, %v72_v48 }
 0x110   :  { %v78_v50 = vmul.f32 %v76_v49, %v44_v18 }
 0x112   :  { %v81_v53 = vmul.f32 %v79_v47, %v78_v50 }
 0x114   :  { %v2285_v55 = vadd.f32 %v82_v52, %v81_v53 }
 0x116   :  { %v91_v56 = vpack.c.bf16 %v2285_v55, %v2283_v54 }
 0x118   :  { %1856 = vmatmul.msk.bf16.vlgmr.msra.gmra.mxu0 %vm27_vm0, %v91_v56 }
 0x195   :  { %v117_v58 = vpop.f32.mrf.mxu0 }
 0x196   :  { %v118_v59 = vadd.f32 %v117_v58, %v92_v57 }
 0x198   :  { %v122_v60 = vpack.c.bf16 %v118_v59, %v118_v59 }
 0x19a   :  { %v125_v61 = vunpack.c.l.b16 %v122_v60 }
 0x19c   :  { %v2291_v62 = vpack.c.b16 %v125_v61, %v125_v61 }
 0x19d   :  { %v119_v63 = vpop.f32.mrf.mxu0 }
 0x19e   :  { %v120_v0 = vadd.f32 %v119_v63, %v92_v57  ;;  %252 = vrot.lane.b32.xlu0 %v2291_v62, %s2201_s6  ;;  %127 = vrot.lane.b32.xlu2 %v2291_v62, %s2202_s7 }
 0x1a0   :  { %v123_v1 = vpack.c.bf16 %v120_v0, %v120_v0 }
 0x1a2   :  { %v150_v2 = vunpack.c.l.b16 %v123_v1 }
 0x1a4   :  { %v2297_v3 = vpack.c.b16 %v150_v2, %v150_v2 }
 0x1a6   :  { %275 = vrot.lane.b32.xlu1 %v2297_v3, %s2201_s6  ;;  %391 = vrot.lane.b32.xlu0 %v2297_v3, %s2203_s8 }
 0x1a7   :  { %152 = vrot.lane.b32.xlu2 %v2297_v3, %s2202_s7 }
 0x1ae   :  { %389 = vrot.lane.b32.xlu1 %v2297_v3, %s2204_s9  ;;  %484 = vrot.lane.b32.xlu0 %v2291_v62, %s2205_s10 }
 0x1af   :  { %250 = vrot.lane.b32.xlu2 %v2291_v62, %s2206_s11 }
 0x1b6   :  { %482 = vrot.lane.b32.xlu1 %v2291_v62, %s2207_s12  ;;  %505 = vrot.lane.b32.xlu0 %v2297_v3, %s2207_s12 }
 0x1b7   :  { %273 = vrot.lane.b32.xlu2 %v2297_v3, %s2206_s11 }
 0x1bf   :  { %368 = vrot.lane.b32.xlu2 %v2291_v62, %s2203_s8 }
 0x1c7   :  { %366 = vrot.lane.b32.xlu2 %v2291_v62, %s2204_s9 }
 0x1cf   :  { %507 = vrot.lane.b32.xlu2 %v2297_v3, %s2205_s10 }
 0x1f8   :  { %v128_v4 = vpop.permute.xlu2 %127 }
 0x1f9   :  { %v134_v5 = vsel %vm129_vm8, %v128_v4, 0 }
 0x1fa   :  { %143 = vmatpush.bf16.xpose.msra.mxu1 %v134_v5 }
 0x201   :  { %v153_v6 = vpop.permute.xlu2 %152  ;;  %1857 = vmatmul.msk.bf16.vlgmr.msra.gmra.mxu1 %vm129_vm8, %v122_v60 }
 0x202   :  { %v158_v7 = vsel %vm129_vm8, %v153_v6, 0 }
 0x203   :  { %167 = vmatpush.bf16.xpose.msra.mxu2 %v158_v7 }
 0x209   :  { %v251_v8 = vpop.permute.xlu2 %250 }
 0x20a   :  { %1858 = vmatmul.msk.bf16.vlgmr.msra.gmra.mxu2 %vm129_vm8, %v123_v1 }
 0x210   :  { %v253_v9 = vpop.permute.xlu0 %252 }
 0x211   :  { %v274_v11 = vpop.permute.xlu2 %273  ;;  %v258_v12 = vsel %vm129_vm8, %v253_v9, 0 }
 0x212   :  { %267 = vmatpush.bf16.xpose.msrb.mxu0 %v258_v12 }
 0x218   :  { %v276_v13 = vpop.permute.xlu1 %275  ;;  %v392_v14 = vpop.permute.xlu0 %391 }
 0x219   :  { %v397_v15 = vsel %vm129_vm8, %v392_v14, 0  ;;  %v369_v16 = vpop.permute.xlu2 %368  ;;  %1861 = vmatmul.msk.bf16.vlgmr.msrb.gmra.mxu0 %vm129_vm8, %v251_v8  ;;  %v281_v17 = vsel %vm129_vm8, %v276_v13, 0 }
 0x21a   :  { %v374_v18 = vsel %vm129_vm8, %v369_v16, 0  ;;  %290 = vmatpush.bf16.xpose.msrb.mxu1 %v281_v17 }
 0x21b   :  { %383 = vmatpush.bf16.xpose.msra.mxu0 %v374_v18 }
 0x220   :  { %v485_v19 = vpop.permute.xlu0 %484  ;;  %v390_v24 = vpop.permute.xlu1 %389 }
 0x221   :  { %v490_v20 = vsel %vm129_vm8, %v485_v19, 0  ;;  %v367_v21 = vpop.permute.xlu2 %366  ;;  %1862 = vmatmul.msk.bf16.vlgmr.msrb.gmra.mxu1 %vm129_vm8, %v274_v11 }
 0x222   :  { %406 = vmatpush.bf16.xpose.msra.mxu1 %v397_v15 }
 0x223   :  { %499 = vmatpush.bf16.xpose.msrb.mxu0 %v490_v20 }
 0x228   :  { %v483_v25 = vpop.permute.xlu1 %482  ;;  %v506_v26 = vpop.permute.xlu0 %505 }
 0x229   :  { %v508_v22 = vpop.permute.xlu2 %507  ;;  %1865 = vmatmul.msk.bf16.vlgmr.msra.gmra.mxu0 %vm129_vm8, %v367_v21 }
 0x22a   :  { %v513_v23 = vsel %vm129_vm8, %v508_v22, 0 }
 0x22b   :  { %522 = vmatpush.bf16.xpose.msrb.mxu1 %v513_v23 }
 0x231   :  { %1866 = vmatmul.msk.bf16.vlgmr.msra.gmra.mxu1 %vm129_vm8, %v390_v24 }
 0x239   :  { %1869 = vmatmul.msk.bf16.vlgmr.msrb.gmra.mxu0 %vm129_vm8, %v483_v25 }
 0x241   :  { %1870 = vmatmul.msk.bf16.vlgmr.msrb.gmra.mxu1 %vm129_vm8, %v506_v26 }
 0x27e   :  { %v145_v28 = vpop.f32.mrf.mxu1 }
 0x27f   :  { %v173_v29 = vmul.f32 0.35355338, %v145_v28 }
 0x281   :  { %v181_v30 = vadd.f32 %v2342_v27, %v173_v29 }
 0x283   :  { %v183_v31 = vsel %vm129_vm8, %v181_v30, -inf }
 0x284   :  { %184 = vmax.xlane.f32.xlu2 %v183_v31 }
 0x286   :  { %v147_v32 = vpop.f32.mrf.mxu1 }
 0x28d   :  { %v169_v34 = vpop.f32.mrf.mxu2 }
 0x28e   :  { %v174_v35 = vmul.f32 0.35355338, %v169_v34 }
 0x290   :  { %v182_v36 = vadd.f32 %v2349_v33, %v174_v35 }
 0x292   :  { %v186_v37 = vsel %vm129_vm8, %v182_v36, -inf }
 0x293   :  { %187 = vmax.xlane.f32.xlu1 %v186_v37 }
 0x295   :  { %v171_v38 = vpop.f32.mrf.mxu2 }
 0x296   :  { %v269_v39 = vpop.f32.mrf.mxu0 }
 0x297   :  { %v296_v40 = vmul.f32 0.35355338, %v269_v39 }
 0x299   :  { %v298_v41 = vadd.f32 %v2342_v27, %v296_v40 }
 0x29b   :  { %v300_v42 = vsel %vm129_vm8, %v298_v41, -inf }
 0x29c   :  { %229 = vrot.lane.b32.xlu2 %v2297_v3, %s2208_s17  ;;  %301 = vmax.xlane.f32.xlu0 %v300_v42 }
 0x29e   :  { %v271_v43 = vpop.f32.mrf.mxu0  ;;  %v292_v45 = vpop.f32.mrf.mxu1 }
 0x29f   :  { %v297_v56 = vmul.f32 0.35355338, %v292_v45 }
 0x2a1   :  { %v299_v58 = vadd.f32 %v2349_v33, %v297_v56 }
 0x2a3   :  { %v303_v60 = vsel %vm129_vm8, %v299_v58, -inf }
 0x2a4   :  { %345 = vrot.lane.b32.xlu2 %v2297_v3, %s2209_s18 }
 0x2a6   :  { %v294_v46 = vpop.f32.mrf.mxu1  ;;  %v385_v47 = vpop.f32.mrf.mxu0 }
 0x2a7   :  { %v412_v61 = vmul.f32 0.35355338, %v385_v47 }
 0x2a9   :  { %v414_v1 = vadd.f32 %v2342_v27, %v412_v61 }
 0x2ab   :  { %v416_v4 = vsel %vm129_vm8, %v414_v1, -inf }
 0x2ac   :  { %207 = vrot.lane.b32.xlu1 %v2291_v62, %s2208_s17 }
 0x2ae   :  { %v387_v48 = vpop.f32.mrf.mxu0  ;;  %v408_v49 = vpop.f32.mrf.mxu1 }
 0x2af   :  { %v413_v0 = vmul.f32 0.35355338, %v408_v49 }
 0x2b0   :  { %324 = vrot.lane.b32.xlu0 %v2291_v62, %s2209_s18 }
 0x2b1   :  { %v415_v5 = vadd.f32 %v2349_v33, %v413_v0 }
 0x2b3   :  { %v419_v7 = vsel %vm129_vm8, %v415_v5, -inf }
 0x2b6   :  { %v410_v50 = vpop.f32.mrf.mxu1  ;;  %v501_v51 = vpop.f32.mrf.mxu0 }
 0x2b7   :  { %v528_v6 = vmul.f32 0.35355338, %v501_v51 }
 0x2b9   :  { %v530_v8 = vadd.f32 %v2342_v27, %v528_v6 }
 0x2bb   :  { %v532_v9 = vsel %vm129_vm8, %v530_v8, -inf }
 0x2be   :  { %v503_v52 = vpop.f32.mrf.mxu0  ;;  %v524_v53 = vpop.f32.mrf.mxu1 }
 0x2bf   :  { %v529_v59 = vmul.f32 0.35355338, %v524_v53 }
 0x2c1   :  { %v2366_v63 = vadd.f32 %v2349_v33, %v529_v59 }
 0x2c3   :  { %v535_v2 = vsel %vm129_vm8, %v2366_v63, -inf }
 0x2c6   :  { %v526_v57 = vpop.f32.mrf.mxu1 }
 0x2cd   :  { %304 = vmax.xlane.f32.xlu2 %v303_v60 }
 0x2d5   :  { %536 = vmax.xlane.f32.xlu2 %v535_v2 }
 0x2d6   :  { %417 = vmax.xlane.f32.xlu1 %v416_v4 }
 0x2da   :  { %420 = vmax.xlane.f32.xlu0 %v419_v7 }
 0x2e2   :  { %533 = vmax.xlane.f32.xlu0 %v532_v9 }
 0x2f7   :  { %v185_v11 = vpop.xlane.xlu2 %184 }
 0x2f8   :  { %v189_v12 = vsub.f32 %v181_v30, %v185_v11 }
 0x2fa   :  { %v191_v13 = vmul.f32 1.442695, %v189_v12 }
 0x2fc   :  { %2076 = vpow2.f32 %v191_v13 }
 0x2ff   :  { %v230_v24 = vpop.permute.xlu2 %229 }
 0x300   :  { %v235_v29 = vsel %vm212_vm9, %v230_v24, 0 }
 0x302   :  { %v2376_v14 = vpop.eup %2076 }
 0x303   :  { %v195_v15 = vsel %vm129_vm8, %v2376_v14, 0.0 }
 0x304   :  { %196 = vadd.xlane.f32.xlu2 %v195_v15 }
 0x306   :  { %v188_v16 = vpop.xlane.xlu1 %187 }
 0x307   :  { %v190_v19 = vsub.f32 %v182_v36, %v188_v16  ;;  %v346_v34 = vpop.permute.xlu2 %345 }
 0x308   :  { %v351_v4 = vsel %vm212_vm9, %v346_v34, 0 }
 0x309   :  { %v193_v21 = vmul.f32 1.442695, %v190_v19 }
 0x30f   :  { %v302_v17 = vpop.xlane.xlu0 %301 }
 0x310   :  { %v306_v18 = vsub.f32 %v298_v41, %v302_v17 }
 0x312   :  { %v308_v20 = vmul.f32 1.442695, %v306_v18 }
 0x314   :  { %2078 = vpow2.f32 %v308_v20 }
 0x315   :  { %2080 = vpow2.f32 %v193_v21 }
 0x31a   :  { %v2380_v22 = vpop.eup %2078 }
 0x31b   :  { %v312_v23 = vsel %vm129_vm8, %v2380_v22, 0.0  ;;  %v2387_v28 = vpop.eup %2080 }
 0x31c   :  { %313 = vadd.xlane.f32.xlu0 %v312_v23  ;;  %461 = vrot.lane.b32.xlu2 %v2297_v3, %s2210_s19  ;;  %v198_v32 = vsel %vm129_vm8, %v2387_v28, 0.0 }
 0x31e   :  { %v208_v25 = vpop.permute.xlu1 %207 }
 0x31f   :  { %v214_v26 = vsel %vm212_vm9, %v208_v25, 0 }
 0x320   :  { %223 = vmatpush.bf16.msra.mxu3 %v214_v26 }
 0x322   :  { %v325_v30 = vpop.permute.xlu0 %324 }
 0x323   :  { %v330_v31 = vsel %vm212_vm9, %v325_v30, 0 }
 0x324   :  { %244 = vmatpush.bf16.msrb.mxu3 %v235_v29  ;;  %339 = vmatpush.bf16.msrb.mxu2 %v330_v31 }
 0x325   :  { %199 = vadd.xlane.f32.xlu0 %v198_v32 }
 0x340   :  { %v305_v35 = vpop.xlane.xlu2 %304 }
 0x341   :  { %v307_v36 = vsub.f32 %v299_v58, %v305_v35 }
 0x343   :  { %v310_v37 = vmul.f32 1.442695, %v307_v36 }
 0x345   :  { %2082 = vpow2.f32 %v310_v37 }
 0x348   :  { %v537_v58 = vpop.xlane.xlu2 %536 }
 0x349   :  { %v418_v38 = vpop.xlane.xlu1 %417  ;;  %v539_v61 = vsub.f32 %v2366_v63, %v537_v58 }
 0x34a   :  { %v422_v39 = vsub.f32 %v414_v1, %v418_v38 }
 0x34b   :  { %v2083_v40 = vpop.eup %2082  ;;  %v542_v2 = vmul.f32 1.442695, %v539_v61  ;;  %v1875_v61 = vld [vmem:[%s2809_s2] sm:$0xf] }
 0x34c   :  { %v424_v41 = vmul.f32 1.442695, %v422_v39  ;;  %v315_v42 = vsel %vm129_vm8, %v2083_v40, 0.0 }
 0x34d   :  { %v421_v43 = vpop.xlane.xlu0 %420  ;;  %316 = vadd.xlane.f32.xlu1 %v315_v42 }
 0x34e   :  { %2084 = vpow2.f32 %v424_v41  ;;  %v423_v45 = vsub.f32 %v415_v5, %v421_v43 }
 0x350   :  { %v426_v46 = vmul.f32 1.442695, %v423_v45 }
 0x352   :  { %2086 = vpow2.f32 %v426_v46 }
 0x354   :  { %v2394_v47 = vpop.eup %2084 }
 0x355   :  { %v534_v48 = vpop.xlane.xlu0 %533  ;;  %v428_v49 = vsel %vm129_vm8, %v2394_v47, 0.0 }
 0x356   :  { %v538_v50 = vsub.f32 %v530_v8, %v534_v48  ;;  %429 = vadd.xlane.f32.xlu2 %v428_v49 }
 0x358   :  { %v2087_v51 = vpop.eup %2086  ;;  %v540_v52 = vmul.f32 1.442695, %v538_v50  ;;  %v1879_v50 = vld [vmem:[%s2809_s2 + $0x28] sm:$0xf] }
 0x359   :  { %v431_v53 = vsel %vm129_vm8, %v2087_v51, 0.0 }
 0x35a   :  { %2088 = vpow2.f32 %v540_v52  ;;  %432 = vadd.xlane.f32.xlu0 %v431_v53 }
 0x360   :  { %v2399_v56 = vpop.eup %2088 }
 0x361   :  { %v544_v57 = vsel %vm129_vm8, %v2399_v56, 0.0 }
 0x362   :  { %545 = vadd.xlane.f32.xlu0 %v544_v57 }
 0x366   :  { %440 = vrot.lane.b32.xlu1 %v2291_v62, %s2210_s19 }
 0x36e   :  { %577 = vrot.lane.b32.xlu2 %v2297_v3, %s2211_s20 }
 0x376   :  { %556 = vrot.lane.b32.xlu0 %v2291_v62, %s2211_s20 }
 0x377   :  { %v197_v59 = vpop.xlane.xlu2 %196 }
 0x378   :  { %2090 = vrcp.f32 %v197_v59 }
 0x379   :  { %2092 = vpow2.f32 %v542_v2 }
 0x37e   :  { %v2091_v60 = vpop.eup %2090 }
 0x37f   :  { %v203_v0 = vmul.f32 %v2091_v60, %v2376_v14  ;;  %v2093_v3 = vpop.eup %2092  ;;  %v462_v12 = vpop.permute.xlu2 %461 }
 0x380   :  { %v547_v6 = vsel %vm129_vm8, %v2093_v3, 0.0  ;;  %v467_v14 = vsel %vm212_vm9, %v462_v12, 0 }
 0x381   :  { %v205_v1 = vpack.c.bf16 %v203_v0, %v203_v0  ;;  %v1996_v0 = vld [vmem:[%s2809_s2 + $0x10] sm:$0xf0] }
 0x382   :  { %v1876_v2 = vor.u32 %v1996_v0, %v1875_v61 }
 0x383   :  { %1859 = vmatmul.msk.bf16.vlgmr.msra.gmra.mxu3 %vm129_vm8, %v205_v1 }
 0x384   :  { %360 = vmatpush.bf16.msra.mxu3 %v351_v4 }
 0x38f   :  { %v314_v5 = vpop.xlane.xlu0 %313 }
 0x390   :  { %2094 = vrcp.f32 %v314_v5  ;;  %548 = vadd.xlane.f32.xlu1 %v547_v6 }
 0x396   :  { %v2095_v62 = vpop.eup %2094 }
 0x397   :  { %v320_v7 = vmul.f32 %v2095_v62, %v2380_v22 }
 0x398   :  { %v200_v63 = vpop.xlane.xlu0 %199 }
 0x399   :  { %2096 = vrcp.f32 %v200_v63  ;;  %v322_v8 = vpack.c.bf16 %v320_v7, %v320_v7 }
 0x39b   :  { %1863 = vmatmul.msk.bf16.vlgmr.msrb.gmra.mxu2 %vm129_vm8, %v322_v8 }
 0x39f   :  { %v2097_v9 = vpop.eup %2096 }
 0x3a0   :  { %v204_v11 = vmul.f32 %v2097_v9, %v2387_v28 }
 0x3a2   :  { %v206_v13 = vpack.c.bf16 %v204_v11, %v204_v11 }
 0x3a4   :  { %1860 = vmatmul.msk.bf16.vlgmr.msrb.gmra.mxu3 %vm129_vm8, %v206_v13 }
 0x3a5   :  { %476 = vmatpush.bf16.msrb.mxu3 %v467_v14 }
 0x3c0   :  { %v317_v15 = vpop.xlane.xlu1 %316 }
 0x3c1   :  { %2098 = vrcp.f32 %v317_v15 }
 0x3c7   :  { %v2099_v16 = vpop.eup %2098 }
 0x3c8   :  { %v321_v17 = vmul.f32 %v2099_v16, %v2083_v40 }
 0x3c9   :  { %v430_v18 = vpop.xlane.xlu2 %429 }
 0x3ca   :  { %v323_v19 = vpack.c.bf16 %v321_v17, %v321_v17  ;;  %2100 = vrcp.f32 %v430_v18 }
 0x3cc   :  { %1864 = vmatmul.msk.bf16.vlgmr.msra.gmra.mxu3 %vm129_vm8, %v323_v19 }
 0x3cd   :  { %v433_v20 = vpop.xlane.xlu0 %432 }
 0x3ce   :  { %2102 = vrcp.f32 %v433_v20 }
 0x3d0   :  { %v2101_v23 = vpop.eup %2100 }
 0x3d1   :  { %v578_v21 = vpop.permute.xlu2 %577  ;;  %v436_v26 = vmul.f32 %v2101_v23, %v2394_v47 }
 0x3d2   :  { %v583_v22 = vsel %vm212_vm9, %v578_v21, 0 }
 0x3d3   :  { %592 = vmatpush.bf16.msra.mxu3 %v583_v22  ;;  %v438_v31 = vpack.c.bf16 %v436_v26, %v436_v26  ;;  %v635_v26 = vperm.slane %v2279_v44, 3 }
 0x3d4   :  { %v2103_v24 = vpop.eup %2102 }
 0x3d5   :  { %v437_v25 = vmul.f32 %v2103_v24, %v2087_v51  ;;  %v546_v32 = vpop.xlane.xlu0 %545  ;;  %v1997_v51 = vld [vmem:[%s2809_s2 + $0x38] sm:$0xf0] }
 0x3d6   :  { %2104 = vrcp.f32 %v546_v32  ;;  %v1880_v52 = vor.u32 %v1997_v51, %v1879_v50  ;;  %v1884_v51 = vld [vmem:[%s2809_s2 + $0x4] sm:$0xf] }
 0x3d7   :  { %v439_v30 = vpack.c.bf16 %v437_v25, %v437_v25 }
 0x3d8   :  { %v441_v28 = vpop.permute.xlu1 %440  ;;  %648 = vrot.lane.b32.xlu0 %v1880_v52, %s2212_s24  ;;  %v1998_v52 = vld [vmem:[%s2809_s2 + $0x14] sm:$0xf0] }
 0x3d9   :  { %v446_v29 = vsel %vm212_vm9, %v441_v28, 0 }
 0x3da   :  { %455 = vmatpush.bf16.msra.mxu2 %v446_v29 }
 0x3dc   :  { %1868 = vmatmul.msk.bf16.vlgmr.msrb.gmra.mxu3 %vm129_vm8, %v439_v30  ;;  %v2105_v34 = vpop.eup %2104 }
 0x3dd   :  { %1867 = vmatmul.msk.bf16.vlgmr.msra.gmra.mxu2 %vm129_vm8, %v438_v31  ;;  %v552_v35 = vmul.f32 %v2105_v34, %v2399_v56 }
 0x3df   :  { %v554_v38 = vpack.c.bf16 %v552_v35, %v552_v35 }
 0x3e8   :  { %v557_v36 = vpop.permute.xlu0 %556 }
 0x3e9   :  { %v562_v37 = vsel %vm212_vm9, %v557_v36, 0 }
 0x3ea   :  { %571 = vmatpush.bf16.msrb.mxu2 %v562_v37 }
 0x3ed   :  { %1871 = vmatmul.msk.bf16.vlgmr.msrb.gmra.mxu2 %vm129_vm8, %v554_v38 }
 0x403   :  { %v549_v39 = vpop.xlane.xlu1 %548 }
 0x404   :  { %2106 = vrcp.f32 %v549_v39 }
 0x406   :  { %v225_v40 = vpop.f32.mrf.mxu3 }
 0x40a   :  { %v2107_v41 = vpop.eup %2106 }
 0x40b   :  { %v553_v42 = vmul.f32 %v2107_v41, %v2093_v3 }
 0x40d   :  { %v555_v43 = vpack.c.bf16 %v553_v42, %v553_v42 }
 0x40e   :  { %v227_v45 = vpop.f32.mrf.mxu3 }
 0x40f   :  { %1872 = vmatmul.msk.bf16.vlgmr.msra.gmra.mxu3 %vm129_vm8, %v555_v43 }
 0x41e   :  { %v341_v46 = vpop.f32.mrf.mxu2 }
 0x426   :  { %v343_v48 = vpop.f32.mrf.mxu2 }
 0x427   :  { %v246_v47 = vpop.f32.mrf.mxu3 }
 0x42f   :  { %v248_v49 = vpop.f32.mrf.mxu3 }
 0x44a   :  { %v649_v63 = vpop.permute.xlu0 %648 }
 0x44b   :  { %661 = vmatpush.bf16.msra.mxu0 %v649_v63 }
 0x44f   :  { %v362_v53 = vpop.f32.mrf.mxu3 }
 0x450   :  { %v2038_v56 = vpack.i.bf16 %v362_v53, %v341_v46 }
 0x452   :  { %2039 = vrot.lane.b32.xlu2 %v2038_v56, %s2213_s25  ;;  %v1885_v56 = vor.u32 %v1998_v52, %v1884_v51 }
 0x457   :  { %v364_v57 = vpop.f32.mrf.mxu3 }
 0x45f   :  { %v478_v58 = vpop.f32.mrf.mxu3 }
 0x460   :  { %v457_v59 = vpop.f32.mrf.mxu2 }
 0x461   :  { %v2043_v60 = vpack.i.bf16 %v478_v58, %v457_v59 }
 0x463   :  { %2044 = vrot.lane.b32.xlu0 %v2043_v60, %s2214_s26 }
 0x467   :  { %v480_v1 = vpop.f32.mrf.mxu3 }
 0x468   :  { %v459_v4 = vpop.f32.mrf.mxu2 }
 0x46b   :  { %646 = vrot.lane.b32.xlu0 %v1876_v2, %s2212_s24 }
 0x470   :  { %v573_v3 = vpop.f32.mrf.mxu2 }
 0x478   :  { %v575_v5 = vpop.f32.mrf.mxu2 }
 0x492   :  { %v594_v6 = vpop.f32.mrf.mxu3 }
 0x493   :  { %v2048_v62 = vpack.i.bf16 %v594_v6, %v573_v3 }
 0x495   :  { %2049 = vrot.lane.b32.xlu2 %v2048_v62, %s2215_s13 }
 0x49a   :  { %v596_v7 = vpop.f32.mrf.mxu3 }
 0x4ac   :  { %v2040_v11 = vpop.permute.xlu2 %2039 }
 0x4ad   :  { %v2042_v12 = vunpack.i.h.bf16 %v2040_v11  ;;  %v2041_v13 = vunpack.i.l.bf16 %v2040_v11 }
 0x4af   :  { %v623_v17 = vsel %vm129_vm8, %v246_v47, %v2042_v12  ;;  %v622_v18 = vsel %vm129_vm8, %v225_v40, %v2041_v13  ;;  %v1999_v47 = vld [vmem:[%s2809_s2 + $0x3c] sm:$0xf0]  ;;  %v718_v13 = vperm.slane %v2279_v44, 5 }
 0x4d5   :  { %v2045_v8 = vpop.permute.xlu0 %2044 }
 0x4d6   :  { %v2047_v14 = vunpack.i.h.bf16 %v2045_v8  ;;  %v2046_v15 = vunpack.i.l.bf16 %v2045_v8  ;;  %v715_v8 = vperm.slane %v2279_v44, 4 }
 0x4d8   :  { %v625_v21 = vsel %vm624_vm10, %v622_v18, %v2046_v15  ;;  %v626_v22 = vsel %vm624_vm10, %v623_v17, %v2047_v14 }
 0x4dd   :  { %v647_v9 = vpop.permute.xlu0 %646 }
 0x4de   :  { %662 = vmatpush.bf16.msra.mxu0 %v647_v9 }
 0x4ef   :  { %v2050_v16 = vpop.permute.xlu2 %2049 }
 0x4f0   :  { %v2052_v19 = vunpack.i.h.bf16 %v2050_v16  ;;  %v2051_v20 = vunpack.i.l.bf16 %v2050_v16 }
 0x4f2   :  { %v628_v23 = vsel %vm627_vm11, %v625_v21, %v2051_v20  ;;  %v629_v24 = vsel %vm627_vm11, %v626_v22, %v2052_v19  ;;  %v2003_v20 = vld [vmem:[%s2810_s3 + $0x18] sm:$0xff]  ;;  %v2002_v21 = vld [vmem:[%s2810_s3 + $0x10] sm:$0xff]  ;;  %v2001_v22 = vld [vmem:[%s2810_s3 + $0x8] sm:$0xff] }
 0x4f3   :  { %v634_v25 = vpack.c.bf16 %v629_v24, %v628_v23  ;;  %816 = vmatpush.bf16.msra.mxu2 %v2003_v20  ;;  %v726_v23 = vperm.slane %v2279_v44, 6 }
 0x4f5   :  { %1881 = vmatmul.msk.bf16.vlgmr.msra.gmra.mxu0 %vm27_vm0, %v634_v25  ;;  %v2000_v25 = vld [vmem:[%s2810_s3] sm:$0xff] }
 0x4f7   :  { %817 = vmatpush.bf16.msra.mxu2 %v2002_v21 }
 0x4fb   :  { %818 = vmatpush.bf16.msra.mxu2 %v2001_v22 }
 0x4ff   :  { %819 = vmatpush.bf16.msra.mxu2 %v2000_v25 }
 0x572   :  { %v664_v28 = vpop.f32.mrf.mxu0 }
 0x573   :  { %v665_v29 = vadd.f32 %v664_v28, %v635_v26 }
 0x575   :  { %v669_v30 = vadd.f32 %v665_v29, %v2283_v54 }
 0x577   :  { %v671_v31 = vsel %vm27_vm0, %v669_v30, 0.0 }
 0x578   :  { %672 = vadd.xlane.f32.xlu1 %v671_v31 }
 0x57a   :  { %v666_v32 = vpop.f32.mrf.mxu0 }
 0x57b   :  { %v667_v34 = vadd.f32 %v666_v32, %v635_v26 }
 0x57d   :  { %v670_v35 = vadd.f32 %v667_v34, %v2285_v55  ;;  %v1888_v55 = vld [vmem:[%s2809_s2 + $0x2c] sm:$0xf] }
 0x57e   :  { %v1889_v48 = vor.u32 %v1999_v47, %v1888_v55 }
 0x57f   :  { %v674_v36 = vsel %vm27_vm0, %v670_v35, 0.0 }
 0x580   :  { %675 = vadd.xlane.f32.xlu2 %v674_v36  ;;  %748 = vmatpush.bf16.msra.mxu1 %v1889_v48 }
 0x584   :  { %749 = vmatpush.bf16.msra.mxu1 %v1885_v56 }
 0x5eb   :  { %v673_v37 = vpop.xlane.xlu1 %672 }
 0x5ec   :  { %v677_v38 = vmul.f32 %v673_v37, %v2256_v10 }
 0x5ee   :  { %v679_v39 = vsub.f32 %v669_v30, %v677_v38 }
 0x5f0   :  { %v681_v40 = vmul.f32 %v679_v39, %v679_v39 }
 0x5f2   :  { %v683_v41 = vsel %vm27_vm0, %v681_v40, 0.0 }
 0x5f3   :  { %v676_v42 = vpop.xlane.xlu2 %675  ;;  %684 = vadd.xlane.f32.xlu0 %v683_v41 }
 0x5f4   :  { %v678_v54 = vmul.f32 %v676_v42, %v2256_v10 }
 0x5f6   :  { %v680_v43 = vsub.f32 %v670_v35, %v678_v54 }
 0x5f8   :  { %v682_v45 = vmul.f32 %v680_v43, %v680_v43 }
 0x5fa   :  { %v686_v46 = vsel %vm27_vm0, %v682_v45, 0.0 }
 0x5fb   :  { %687 = vadd.xlane.f32.xlu1 %v686_v46 }
 0x666   :  { %v685_v49 = vpop.xlane.xlu0 %684 }
 0x667   :  { %v689_v50 = vmul.f32 %v685_v49, %v2256_v10  ;;  %v783_v49 = vperm.slane %v2279_v44, 7 }
 0x669   :  { %v691_v53 = vadd.f32 1e-12, %v689_v50 }
 0x66b   :  { %2108 = vrsqrt.f32 %v691_v53  ;;  %vm699_vm13 = vweird.f32 %v691_v53 }
 0x66e   :  { %v688_v57 = vpop.xlane.xlu1 %687 }
 0x66f   :  { %v690_v58 = vmul.f32 %v688_v57, %v2256_v10 }
 0x671   :  { %v2109_v59 = vpop.eup %2108  ;;  %v692_v60 = vadd.f32 1e-12, %v690_v58 }
 0x672   :  { %v694_v61 = vmul.f32 %v2109_v59, %v691_v53  ;;  %vm700_vm12 = vweird.f32 %v2109_v59 }
 0x673   :  { %2110 = vrsqrt.f32 %v692_v60  ;;  %vm701_vm14 = vmor %vm699_vm13, %vm700_vm12  ;;  %vm709_vm1 = vweird.f32 %v692_v60 }
 0x674   :  { %v695_v0 = vmul.f32 %v2109_v59, %v694_v61 }
 0x676   :  { %v696_v1 = vmul.f32 0.5, %v695_v0 }
 0x678   :  { %v697_v2 = vsub.f32 1.5, %v696_v1 }
 0x679   :  { %v2111_v4 = vpop.eup %2110 }
 0x67a   :  { %v698_v3 = vmul.f32 %v2109_v59, %v697_v2  ;;  %v704_v5 = vmul.f32 %v2111_v4, %v692_v60  ;;  %vm710_vm15 = vweird.f32 %v2111_v4 }
 0x67b   :  { %vm711_vm2 = vmor %vm709_vm1, %vm710_vm15 }
 0x67c   :  { %v705_v6 = vmul.f32 %v2111_v4, %v704_v5  ;;  %v702_v62 = vsel %vm701_vm14, %v2109_v59, %v698_v3  ;;  %v1910_v3 = vld [vmem:[%s2809_s2 + $0x4] sm:$0xf]  ;;  %v2005_v5 = vld [vmem:[%s2809_s2 + $0x14] sm:$0xf0] }
 0x67d   :  { %v713_v9 = vmul.f32 %v702_v62, %v679_v39  ;;  %v1911_v62 = vor.u32 %v2005_v5, %v1910_v3 }
 0x67e   :  { %v706_v7 = vmul.f32 0.5, %v705_v6  ;;  %v1918_v6 = vld [vmem:[%s2809_s2 + $0x2c] sm:$0xf] }
 0x67f   :  { %v716_v14 = vmul.f32 %v715_v8, %v713_v9  ;;  %900 = vrot.lane.b32.xlu0 %v1911_v62, %s2208_s17 }
 0x680   :  { %v707_v63 = vsub.f32 1.5, %v706_v7  ;;  %v2007_v7 = vld [vmem:[%s2809_s2 + $0x3c] sm:$0xf0] }
 0x681   :  { %v719_v17 = vadd.f32 %v718_v13, %v716_v14 }
 0x682   :  { %v708_v11 = vmul.f32 %v2111_v4, %v707_v63 }
 0x684   :  { %v712_v12 = vsel %vm711_vm2, %v2111_v4, %v708_v11  ;;  %v2004_v11 = vld [vmem:[%s2809_s2 + $0x8] sm:$0xf] }
 0x685   :  { %v714_v15 = vmul.f32 %v712_v12, %v680_v43  ;;  %v1912_v12 = vld [vmem:[%s2809_s2 + $0x18] sm:$0xf0] }
 0x686   :  { %v1915_v14 = vor.u32 %v2004_v11, %v1912_v12 }
 0x687   :  { %v717_v16 = vmul.f32 %v715_v8, %v714_v15  ;;  %v1919_v8 = vor.u32 %v2007_v7, %v1918_v6  ;;  %v2006_v15 = vld [vmem:[%s2809_s2 + $0x30] sm:$0xf] }
 0x689   :  { %v720_v18 = vadd.f32 %v718_v13, %v717_v16  ;;  %904 = vrot.lane.b32.xlu2 %v1919_v8, %s2208_s17  ;;  %v1920_v16 = vld [vmem:[%s2809_s2 + $0x40] sm:$0xf0] }
 0x68b   :  { %v725_v19 = vpack.c.bf16 %v720_v18, %v719_v17 }
 0x68d   :  { %1890 = vmatmul.msk.bf16.vlgmr.msra.gmra.mxu1 %vm27_vm0, %v725_v19 }
 0x691   :  { %902 = vrot.lane.b32.xlu2 %v1915_v14, %s2208_s17 }
 0x70a   :  { %v751_v24 = vpop.f32.mrf.mxu1 }
 0x70b   :  { %v752_v26 = vadd.f32 %v751_v24, %v726_v23 }
 0x70d   :  { %v756_v28 = vmul.f32 %v752_v26, %v752_v26 }
 0x70f   :  { %v758_v29 = vmul.f32 %v756_v28, %v752_v26 }
 0x711   :  { %v760_v30 = vmul.f32 0.044715, %v758_v29 }
 0x712   :  { %v753_v31 = vpop.f32.mrf.mxu1 }
 0x713   :  { %v762_v32 = vadd.f32 %v760_v30, %v752_v26  ;;  %v754_v34 = vadd.f32 %v753_v31, %v726_v23 }
 0x715   :  { %v764_v35 = vmul.f32 0.7978846, %v762_v32  ;;  %v757_v36 = vmul.f32 %v754_v34, %v754_v34 }
 0x717   :  { %v759_v37 = vmul.f32 %v757_v36, %v754_v34  ;;  %2112 = vtanh.f32 %v764_v35  ;;  %v905_v35 = vpop.permute.xlu2 %904 }
 0x719   :  { %v761_v38 = vmul.f32 0.044715, %v759_v37  ;;  %v2531_v37 = vld [vmem:[%s2811_s4 + $0x8] sm:$0xff] }
 0x71b   :  { %v763_v39 = vadd.f32 %v761_v38, %v754_v34 }
 0x71d   :  { %v765_v40 = vmul.f32 0.7978846, %v763_v39  ;;  %v2113_v41 = vpop.eup %2112 }
 0x71e   :  { %v768_v42 = vadd.f32 1.0, %v2113_v41  ;;  %v872_v41 = vperm.slane %v2531_v37, 0 }
 0x71f   :  { %2114 = vtanh.f32 %v765_v40 }
 0x720   :  { %v770_v43 = vmul.f32 0.5, %v768_v42 }
 0x722   :  { %v772_v55 = vmul.f32 %v770_v43, %v752_v26 }
 0x725   :  { %v2115_v54 = vpop.eup %2114 }
 0x726   :  { %v769_v45 = vadd.f32 1.0, %v2115_v54 }
 0x728   :  { %v771_v46 = vmul.f32 0.5, %v769_v45  ;;  %v901_v45 = vpop.permute.xlu0 %900 }
 0x72a   :  { %v773_v47 = vmul.f32 %v771_v46, %v754_v34 }
 0x72c   :  { %v782_v48 = vpack.c.bf16 %v773_v47, %v772_v55  ;;  %v903_v55 = vpop.permute.xlu2 %902  ;;  %v875_v47 = vperm.slane %v2531_v37, 1 }
 0x72e   :  { %1907 = vmatmul.msk.bf16.vlgmr.msra.gmra.mxu2 %vm808_vm3, %v782_v48 }
 0x7b1   :  { %v821_v50 = vpop.f32.mrf.mxu2 }
 0x7b2   :  { %v822_v51 = vadd.f32 %v821_v50, %v783_v49 }
 0x7b4   :  { %v826_v52 = vadd.f32 %v822_v51, %v719_v17  ;;  %v1923_v17 = vor.u32 %v2006_v15, %v1920_v16 }
 0x7b6   :  { %v828_v53 = vsel %vm27_vm0, %v826_v52, 0.0 }
 0x7b7   :  { %829 = vadd.xlane.f32.xlu1 %v828_v53 }
 0x7b9   :  { %v823_v56 = vpop.f32.mrf.mxu2 }
 0x7ba   :  { %v824_v57 = vadd.f32 %v823_v56, %v783_v49 }
 0x7bc   :  { %v827_v58 = vadd.f32 %v824_v57, %v720_v18  ;;  %v883_v57 = vperm.slane %v2531_v37, 2 }
 0x7be   :  { %v831_v59 = vsel %vm27_vm0, %v827_v58, 0.0 }
 0x7bf   :  { %832 = vadd.xlane.f32.xlu1 %v831_v59 }
 0x82a   :  { %v830_v60 = vpop.xlane.xlu1 %829 }
 0x82b   :  { %v834_v61 = vmul.f32 %v830_v60, %v2256_v10 }
 0x82d   :  { %v836_v0 = vsub.f32 %v826_v52, %v834_v61  ;;  %v909_v52 = vsel %vm808_vm3, %v901_v45, %v903_v55 }
 0x82f   :  { %v838_v1 = vmul.f32 %v836_v0, %v836_v0 }
 0x831   :  { %v840_v2 = vsel %vm27_vm0, %v838_v1, 0.0 }
 0x832   :  { %841 = vadd.xlane.f32.xlu1 %v840_v2  ;;  %v833_v44 = vpop.xlane.xlu1 %832 }
 0x833   :  { %v835_v4 = vmul.f32 %v833_v44, %v2256_v10 }
 0x835   :  { %v837_v63 = vsub.f32 %v827_v58, %v835_v4 }
 0x837   :  { %v839_v9 = vmul.f32 %v837_v63, %v837_v63 }
 0x839   :  { %v843_v13 = vsel %vm27_vm0, %v839_v9, 0.0 }
 0x83a   :  { %844 = vadd.xlane.f32.xlu1 %v843_v13 }
 0x853   :  { %906 = vrot.lane.b32.xlu1 %v1923_v17, %s2208_s17 }
 0x8a5   :  { %v842_v18 = vpop.xlane.xlu1 %841 }
 0x8a6   :  { %v846_v19 = vmul.f32 %v842_v18, %v2256_v10 }
 0x8a8   :  { %v848_v20 = vadd.f32 1e-12, %v846_v19 }
 0x8aa   :  { %2116 = vrsqrt.f32 %v848_v20  ;;  %vm856_vm5 = vweird.f32 %v848_v20 }
 0x8ad   :  { %v845_v21 = vpop.xlane.xlu1 %844 }
 0x8ae   :  { %v847_v22 = vmul.f32 %v845_v21, %v2256_v10 }
 0x8b0   :  { %v2117_v23 = vpop.eup %2116  ;;  %v849_v24 = vadd.f32 1e-12, %v847_v22 }
 0x8b1   :  { %v851_v25 = vmul.f32 %v2117_v23, %v848_v20  ;;  %vm857_vm4 = vweird.f32 %v2117_v23 }
 0x8b2   :  { %2118 = vrsqrt.f32 %v849_v24  ;;  %vm858_vm6 = vmor %vm856_vm5, %vm857_vm4  ;;  %vm866_vm12 = vweird.f32 %v849_v24 }
 0x8b3   :  { %v852_v26 = vmul.f32 %v2117_v23, %v851_v25 }
 0x8b5   :  { %v853_v28 = vmul.f32 0.5, %v852_v26 }
 0x8b7   :  { %v854_v29 = vsub.f32 1.5, %v853_v28 }
 0x8b8   :  { %v2119_v30 = vpop.eup %2118 }
 0x8b9   :  { %v861_v31 = vmul.f32 %v2119_v30, %v849_v24  ;;  %v855_v32 = vmul.f32 %v2117_v23, %v854_v29  ;;  %vm867_vm7 = vweird.f32 %v2119_v30 }
 0x8ba   :  { %vm868_vm13 = vmor %vm866_vm12, %vm867_vm7  ;;  %vm1806_vm7 = vcmask 785408  }
 0x8bb   :  { %v862_v34 = vmul.f32 %v2119_v30, %v861_v31  ;;  %v859_v38 = vsel %vm858_vm6, %v2117_v23, %v855_v32 }
 0x8bc   :  { %v870_v42 = vmul.f32 %v859_v38, %v836_v0 }
 0x8bd   :  { %v863_v36 = vmul.f32 0.5, %v862_v34 }
 0x8be   :  { %v873_v48 = vmul.f32 %v872_v41, %v870_v42 }
 0x8bf   :  { %v864_v39 = vsub.f32 1.5, %v863_v36 }
 0x8c0   :  { %v2539_v53 = vadd.f32 %v875_v47, %v873_v48 }
 0x8c1   :  { %v865_v40 = vmul.f32 %v2119_v30, %v864_v39 }
 0x8c3   :  { %v869_v54 = vsel %vm868_vm13, %v2119_v30, %v865_v40 }
 0x8c4   :  { %v871_v43 = vmul.f32 %v869_v54, %v837_v63  ;;  %v2172_v54 = vld [vmem:[%s2808_s1] ss:$0 sm:$0xff] }
 0x8c5   :  { %v907_v46 = vpop.permute.xlu1 %906 }
 0x8c6   :  { %v874_v49 = vmul.f32 %v872_v41, %v871_v43  ;;  %v910_v50 = vsel %vm808_vm3, %v905_v35, %v907_v46 }
 0x8c7   :  { %922 = vmatpush.bf16.msrb.mxu3 %v910_v50 }
 0x8c8   :  { %v2536_v51 = vadd.f32 %v875_v47, %v874_v49 }
 0x8ca   :  { %v882_v56 = vpack.c.bf16 %v2536_v51, %v2539_v53 }
 0x8cb   :  { %923 = vmatpush.bf16.msrb.mxu3 %v909_v52 }
 0x8ce   :  { %1924 = vmatmul.msk.bf16.vlgmr.msrb.gmra.mxu3 %vm27_vm0, %v882_v56 }
 0x951   :  { %v925_v58 = vpop.f32.mrf.mxu3 }
 0x952   :  { %v926_v59 = vadd.f32 %v925_v58, %v883_v57 }
 0x954   :  { %v930_v60 = vpack.c.bf16 %v926_v59, %v926_v59 }
 0x956   :  { %v933_v61 = vunpack.c.l.b16 %v930_v60 }
 0x958   :  { %v2545_v0 = vpack.c.b16 %v933_v61, %v933_v61 }
 0x959   :  { %v927_v1 = vpop.f32.mrf.mxu3 }
 0x95a   :  { %v928_v2 = vadd.f32 %v927_v1, %v883_v57  ;;  %1052 = vrot.lane.b32.xlu2 %v2545_v0, %s2201_s6  ;;  %935 = vrot.lane.b32.xlu0 %v2545_v0, %s2202_s7 }
 0x95c   :  { %v931_v44 = vpack.c.bf16 %v928_v2, %v928_v2 }
 0x95e   :  { %v957_v4 = vunpack.c.l.b16 %v931_v44 }
 0x960   :  { %v2551_v3 = vpack.c.b16 %v957_v4, %v957_v4 }
 0x962   :  { %959 = vrot.lane.b32.xlu1 %v2551_v3, %s2202_s7  ;;  %1073 = vrot.lane.b32.xlu2 %v2551_v3, %s2206_s11 }
 0x963   :  { %1075 = vrot.lane.b32.xlu0 %v2551_v3, %s2201_s6 }
 0x96a   :  { %1050 = vrot.lane.b32.xlu1 %v2545_v0, %s2206_s11  ;;  %1166 = vrot.lane.b32.xlu2 %v2545_v0, %s2204_s9 }
 0x96b   :  { %1168 = vrot.lane.b32.xlu0 %v2545_v0, %s2203_s8 }
 0x972   :  { %1191 = vrot.lane.b32.xlu1 %v2551_v3, %s2203_s8  ;;  %1307 = vrot.lane.b32.xlu2 %v2551_v3, %s2205_s10 }
 0x973   :  { %1189 = vrot.lane.b32.xlu0 %v2551_v3, %s2204_s9 }
 0x97a   :  { %1284 = vrot.lane.b32.xlu1 %v2545_v0, %s2205_s10 }
 0x97b   :  { %1282 = vrot.lane.b32.xlu0 %v2545_v0, %s2207_s12 }
 0x982   :  { %1305 = vrot.lane.b32.xlu1 %v2551_v3, %s2207_s12 }
 0x983   :  { %1008 = vrot.lane.b32.xlu0 %v2545_v0, %s2208_s17 }
 0x9b4   :  { %v1053_v5 = vpop.permute.xlu2 %1052 }
 0x9b5   :  { %v1058_v7 = vsel %vm129_vm8, %v1053_v5, 0 }
 0x9bc   :  { %v1074_v11 = vpop.permute.xlu2 %1073 }
 0x9c4   :  { %v1167_v16 = vpop.permute.xlu2 %1166 }
 0x9cc   :  { %v936_v6 = vpop.permute.xlu0 %935  ;;  %v1308_v20 = vpop.permute.xlu2 %1307 }
 0x9cd   :  { %v941_v62 = vsel %vm129_vm8, %v936_v6, 0  ;;  %v1313_v22 = vsel %vm129_vm8, %v1308_v20, 0 }
 0x9ce   :  { %950 = vmatpush.bf16.xpose.msrb.mxu0 %v941_v62 }
 0x9d4   :  { %v960_v63 = vpop.permute.xlu1 %959 }
 0x9d5   :  { %v965_v8 = vsel %vm129_vm8, %v960_v63, 0  ;;  %v1076_v9 = vpop.permute.xlu0 %1075  ;;  %1925 = vmatmul.msk.bf16.vlgmr.msrb.gmra.mxu0 %vm129_vm8, %v930_v60 }
 0x9d6   :  { %1067 = vmatpush.bf16.xpose.msra.mxu0 %v1058_v7  ;;  %v1081_v12 = vsel %vm129_vm8, %v1076_v9, 0  ;;  %974 = vmatpush.bf16.xpose.msrb.mxu1 %v965_v8 }
 0x9dc   :  { %v1051_v13 = vpop.permute.xlu1 %1050 }
 0x9dd   :  { %v1169_v14 = vpop.permute.xlu0 %1168  ;;  %1926 = vmatmul.msk.bf16.vlgmr.msrb.gmra.mxu1 %vm129_vm8, %v931_v44 }
 0x9de   :  { %1090 = vmatpush.bf16.xpose.msra.mxu1 %v1081_v12  ;;  %v1174_v15 = vsel %vm129_vm8, %v1169_v14, 0 }
 0x9df   :  { %1183 = vmatpush.bf16.xpose.msrb.mxu0 %v1174_v15 }
 0x9e4   :  { %v1192_v17 = vpop.permute.xlu1 %1191 }
 0x9e5   :  { %v1197_v18 = vsel %vm129_vm8, %v1192_v17, 0  ;;  %v1190_v19 = vpop.permute.xlu0 %1189  ;;  %1929 = vmatmul.msk.bf16.vlgmr.msra.gmra.mxu0 %vm129_vm8, %v1051_v13 }
 0x9e6   :  { %1206 = vmatpush.bf16.xpose.msrb.mxu1 %v1197_v18 }
 0x9ec   :  { %v1285_v21 = vpop.permute.xlu1 %1284 }
 0x9ed   :  { %v1290_v23 = vsel %vm129_vm8, %v1285_v21, 0  ;;  %v1283_v24 = vpop.permute.xlu0 %1282  ;;  %1930 = vmatmul.msk.bf16.vlgmr.msra.gmra.mxu1 %vm129_vm8, %v1074_v11 }
 0x9ee   :  { %1322 = vmatpush.bf16.xpose.msra.mxu1 %v1313_v22  ;;  %1299 = vmatpush.bf16.xpose.msra.mxu0 %v1290_v23 }
 0x9f4   :  { %v1306_v28 = vpop.permute.xlu1 %1305 }
 0x9f5   :  { %v1009_v25 = vpop.permute.xlu0 %1008  ;;  %1933 = vmatmul.msk.bf16.vlgmr.msrb.gmra.mxu0 %vm129_vm8, %v1167_v16 }
 0x9f6   :  { %v1014_v26 = vsel %vm212_vm9, %v1009_v25, 0 }
 0x9f7   :  { %1023 = vmatpush.bf16.msrb.mxu2 %v1014_v26 }
 0x9fd   :  { %1934 = vmatmul.msk.bf16.vlgmr.msrb.gmra.mxu1 %vm129_vm8, %v1190_v19 }
 0xa05   :  { %1937 = vmatmul.msk.bf16.vlgmr.msra.gmra.mxu0 %vm129_vm8, %v1283_v24 }
 0xa0d   :  { %1938 = vmatmul.msk.bf16.vlgmr.msra.gmra.mxu1 %vm129_vm8, %v1306_v28 }
 0xa52   :  { %v952_v29 = vpop.f32.mrf.mxu0 }
 0xa53   :  { %v980_v30 = vmul.f32 0.35355338, %v952_v29 }
 0xa55   :  { %v982_v31 = vadd.f32 %v2342_v27, %v980_v30 }
 0xa57   :  { %v984_v32 = vsel %vm129_vm8, %v982_v31, -inf }
 0xa58   :  { %985 = vmax.xlane.f32.xlu2 %v984_v32 }
 0xa5a   :  { %v954_v34 = vpop.f32.mrf.mxu0  ;;  %v976_v35 = vpop.f32.mrf.mxu1 }
 0xa5b   :  { %v981_v36 = vmul.f32 0.35355338, %v976_v35 }
 0xa5d   :  { %v983_v38 = vadd.f32 %v2349_v33, %v981_v36  ;;  %v2173_v33 = vld [vmem:[%s2808_s1 + $0x1] ss:$0 sm:$0xff] }
 0xa5f   :  { %v987_v39 = vsel %vm129_vm8, %v983_v38, -inf }
 0xa60   :  { %988 = vmax.xlane.f32.xlu0 %v987_v39 }
 0xa62   :  { %v978_v40 = vpop.f32.mrf.mxu1  ;;  %v1069_v41 = vpop.f32.mrf.mxu0 }
 0xa63   :  { %v1096_v42 = vmul.f32 0.35355338, %v1069_v41 }
 0xa65   :  { %v1098_v43 = vadd.f32 %v2172_v54, %v1096_v42 }
 0xa67   :  { %v1100_v27 = vsel %vm129_vm8, %v1098_v43, -inf }
 0xa68   :  { %1101 = vmax.xlane.f32.xlu1 %v1100_v27 }
 0xa6a   :  { %v1071_v45 = vpop.f32.mrf.mxu0  ;;  %v1092_v46 = vpop.f32.mrf.mxu1 }
 0xa6b   :  { %v1097_v55 = vmul.f32 0.35355338, %v1092_v46 }
 0xa6d   :  { %v1099_v47 = vadd.f32 %v2173_v33, %v1097_v55 }
 0xa6f   :  { %v1103_v48 = vsel %vm129_vm8, %v1099_v47, -inf }
 0xa70   :  { %1104 = vmax.xlane.f32.xlu2 %v1103_v48 }
 0xa72   :  { %v1094_v49 = vpop.f32.mrf.mxu1  ;;  %v1185_v50 = vpop.f32.mrf.mxu0 }
 0xa73   :  { %v1212_v52 = vmul.f32 0.35355338, %v1185_v50 }
 0xa75   :  { %v1214_v56 = vadd.f32 %v2172_v54, %v1212_v52 }
 0xa77   :  { %v1216_v57 = vsel %vm129_vm8, %v1214_v56, -inf }
 0xa78   :  { %1217 = vmax.xlane.f32.xlu0 %v1216_v57 }
 0xa7a   :  { %v1187_v58 = vpop.f32.mrf.mxu0  ;;  %v1208_v59 = vpop.f32.mrf.mxu1 }
 0xa7b   :  { %v1213_v60 = vmul.f32 0.35355338, %v1208_v59 }
 0xa7d   :  { %v1215_v61 = vadd.f32 %v2173_v33, %v1213_v60 }
 0xa7f   :  { %v1219_v1 = vsel %vm129_vm8, %v1215_v61, -inf }
 0xa80   :  { %1220 = vmax.xlane.f32.xlu1 %v1219_v1 }
 0xa82   :  { %v1210_v2 = vpop.f32.mrf.mxu1  ;;  %v1301_v44 = vpop.f32.mrf.mxu0 }
 0xa83   :  { %v1328_v4 = vmul.f32 0.35355338, %v1301_v44 }
 0xa85   :  { %v2610_v5 = vadd.f32 %v2172_v54, %v1328_v4 }
 0xa87   :  { %v1332_v6 = vsel %vm129_vm8, %v2610_v5, -inf }
 0xa88   :  { %1333 = vmax.xlane.f32.xlu2 %v1332_v6 }
 0xa8a   :  { %v1303_v62 = vpop.f32.mrf.mxu0  ;;  %v1324_v7 = vpop.f32.mrf.mxu1 }
 0xa8b   :  { %v1329_v63 = vmul.f32 0.35355338, %v1324_v7 }
 0xa8d   :  { %v1331_v8 = vadd.f32 %v2173_v33, %v1329_v63 }
 0xa8f   :  { %v1335_v9 = vsel %vm129_vm8, %v1331_v8, -inf }
 0xa90   :  { %1336 = vmax.xlane.f32.xlu0 %v1335_v9 }
 0xa92   :  { %v1326_v11 = vpop.f32.mrf.mxu1 }
 0xaa0   :  { %1145 = vrot.lane.b32.xlu2 %v2551_v3, %s2209_s18 }
 0xaa4   :  { %1124 = vrot.lane.b32.xlu0 %v2545_v0, %s2209_s18 }
 0xaa8   :  { %1240 = vrot.lane.b32.xlu2 %v2545_v0, %s2210_s19 }
 0xacb   :  { %v986_v12 = vpop.xlane.xlu2 %985 }
 0xacc   :  { %v990_v13 = vsub.f32 %v982_v31, %v986_v12 }
 0xace   :  { %v992_v14 = vmul.f32 1.442695, %v990_v13 }
 0xad0   :  { %2120 = vpow2.f32 %v992_v14 }
 0xad3   :  { %v989_v15 = vpop.xlane.xlu0 %988 }
 0xad4   :  { %v991_v16 = vsub.f32 %v983_v38, %v989_v15 }
 0xad6   :  { %v2121_v17 = vpop.eup %2120  ;;  %v994_v18 = vmul.f32 1.442695, %v991_v16 }
 0xad7   :  { %v996_v19 = vsel %vm129_vm8, %v2121_v17, 0.0 }
 0xad8   :  { %2122 = vpow2.f32 %v994_v18  ;;  %997 = vadd.xlane.f32.xlu1 %v996_v19 }
 0xadb   :  { %v1102_v20 = vpop.xlane.xlu1 %1101 }
 0xadc   :  { %v1106_v21 = vsub.f32 %v1098_v43, %v1102_v20 }
 0xade   :  { %v2622_v22 = vpop.eup %2122  ;;  %v1108_v23 = vmul.f32 1.442695, %v1106_v21 }
 0xadf   :  { %v999_v24 = vsel %vm129_vm8, %v2622_v22, 0.0 }
 0xae0   :  { %2124 = vpow2.f32 %v1108_v23  ;;  %1000 = vadd.xlane.f32.xlu2 %v999_v24 }
 0xae3   :  { %v1105_v25 = vpop.xlane.xlu2 %1104 }
 0xae4   :  { %v1107_v26 = vsub.f32 %v1099_v47, %v1105_v25 }
 0xae6   :  { %v2125_v28 = vpop.eup %2124  ;;  %v1110_v29 = vmul.f32 1.442695, %v1107_v26 }
 0xae7   :  { %v1112_v30 = vsel %vm129_vm8, %v2125_v28, 0.0 }
 0xae8   :  { %2126 = vpow2.f32 %v1110_v29  ;;  %1113 = vadd.xlane.f32.xlu2 %v1112_v30 }
 0xaeb   :  { %v1218_v31 = vpop.xlane.xlu0 %1217 }
 0xaec   :  { %v1222_v32 = vsub.f32 %v1214_v56, %v1218_v31 }
 0xaee   :  { %v2627_v34 = vpop.eup %2126  ;;  %v1224_v35 = vmul.f32 1.442695, %v1222_v32 }
 0xaef   :  { %v1115_v36 = vsel %vm129_vm8, %v2627_v34, 0.0 }
 0xaf0   :  { %2128 = vpow2.f32 %v1224_v35  ;;  %1116 = vadd.xlane.f32.xlu2 %v1115_v36 }
 0xaf1   :  { %1029 = vrot.lane.b32.xlu1 %v2551_v3, %s2208_s17 }
 0xaf3   :  { %v1221_v42 = vpop.xlane.xlu1 %1220 }
 0xaf4   :  { %v1223_v43 = vsub.f32 %v1215_v61, %v1221_v42 }
 0xaf6   :  { %v2633_v38 = vpop.eup %2128  ;;  %v1226_v27 = vmul.f32 1.442695, %v1223_v43 }
 0xaf7   :  { %v1228_v39 = vsel %vm129_vm8, %v2633_v38, 0.0 }
 0xaf8   :  { %1229 = vadd.xlane.f32.xlu0 %v1228_v39 }
 0xafb   :  { %v1334_v49 = vpop.xlane.xlu2 %1333 }
 0xafc   :  { %v1338_v50 = vsub.f32 %v2610_v5, %v1334_v49  ;;  %v1947_v49 = vld [vmem:[%s2809_s2 + $0x30] sm:$0xf] }
 0xafe   :  { %v1340_v52 = vmul.f32 1.442695, %v1338_v50  ;;  %v2009_v50 = vld [vmem:[%s2809_s2 + $0x40] sm:$0xf0] }
 0xb03   :  { %v1337_v40 = vpop.xlane.xlu0 %1336  ;;  %v1146_v58 = vpop.permute.xlu2 %1145 }
 0xb04   :  { %v1339_v41 = vsub.f32 %v1331_v8, %v1337_v40  ;;  %v1151_v9 = vsel %vm212_vm9, %v1146_v58, 0 }
 0xb06   :  { %v1342_v54 = vmul.f32 1.442695, %v1339_v41 }
 0xb08   :  { %2130 = vpow2.f32 %v1342_v54  ;;  %1261 = vrot.lane.b32.xlu2 %v2551_v3, %s2210_s19 }
 0xb09   :  { %2132 = vpow2.f32 %v1226_v27 }
 0xb0a   :  { %2134 = vpow2.f32 %v1340_v52  ;;  %v1948_v52 = vor.u32 %v2009_v50, %v1947_v49  ;;  %v2011_v50 = vld [vmem:[%s2810_s3 + $0x8] sm:$0xff] }
 0xb0b   :  { %v1241_v59 = vpop.permute.xlu2 %1240 }
 0xb0e   :  { %v2639_v45 = vpop.eup %2130 }
 0xb0f   :  { %v1347_v46 = vsel %vm129_vm8, %v2639_v45, 0.0  ;;  %v2133_v33 = vpop.eup %2132 }
 0xb10   :  { %1348 = vadd.xlane.f32.xlu0 %v1347_v46  ;;  %v1231_v48 = vsel %vm129_vm8, %v2133_v33, 0.0  ;;  %v2648_v56 = vpop.eup %2134 }
 0xb11   :  { %v1344_v57 = vsel %vm129_vm8, %v2648_v56, 0.0 }
 0xb16   :  { %v1125_v55 = vpop.permute.xlu0 %1124 }
 0xb17   :  { %v1130_v47 = vsel %vm212_vm9, %v1125_v55, 0 }
 0xb18   :  { %1139 = vmatpush.bf16.msra.mxu2 %v1130_v47 }
 0xb1b   :  { %1232 = vadd.xlane.f32.xlu1 %v1231_v48 }
 0xb24   :  { %1377 = vrot.lane.b32.xlu0 %v2551_v3, %s2211_s20  ;;  %v1246_v3 = vsel %vm212_vm9, %v1241_v59, 0 }
 0xb31   :  { %1345 = vadd.xlane.f32.xlu2 %v1344_v57  ;;  %v2008_v57 = vld [vmem:[%s2809_s2 + $0x18] sm:$0xf0] }
 0xb34   :  { %1356 = vrot.lane.b32.xlu1 %v2545_v0, %s2211_s20 }
 0xb3c   :  { %1446 = vrot.lane.b32.xlu1 %v1948_v52, %s2202_s7 }
 0xb4b   :  { %v998_v60 = vpop.xlane.xlu1 %997 }
 0xb4c   :  { %2136 = vrcp.f32 %v998_v60 }
 0xb52   :  { %v2137_v61 = vpop.eup %2136 }
 0xb53   :  { %v1004_v1 = vmul.f32 %v2137_v61, %v2121_v17  ;;  %v1001_v2 = vpop.xlane.xlu2 %1000 }
 0xb54   :  { %2138 = vrcp.f32 %v1001_v2 }
 0xb55   :  { %v1006_v44 = vpack.c.bf16 %v1004_v1, %v1004_v1 }
 0xb57   :  { %1927 = vmatmul.msk.bf16.vlgmr.msrb.gmra.mxu2 %vm129_vm8, %v1006_v44 }
 0xb58   :  { %1255 = vmatpush.bf16.msrb.mxu2 %v1246_v3 }
 0xb5a   :  { %v2139_v5 = vpop.eup %2138 }
 0xb5b   :  { %v1114_v4 = vpop.xlane.xlu2 %1113  ;;  %v1005_v0 = vmul.f32 %v2139_v5, %v2622_v22 }
 0xb5c   :  { %2140 = vrcp.f32 %v1114_v4 }
 0xb5d   :  { %v1007_v12 = vpack.c.bf16 %v1005_v0, %v1005_v0 }
 0xb62   :  { %v2141_v6 = vpop.eup %2140 }
 0xb63   :  { %v1120_v62 = vmul.f32 %v2141_v6, %v2125_v28  ;;  %v1030_v7 = vpop.permute.xlu1 %1029  ;;  %v1117_v63 = vpop.xlane.xlu2 %1116 }
 0xb64   :  { %v1035_v8 = vsel %vm212_vm9, %v1030_v7, 0  ;;  %2142 = vrcp.f32 %v1117_v63 }
 0xb65   :  { %v1122_v11 = vpack.c.bf16 %v1120_v62, %v1120_v62  ;;  %1044 = vmatpush.bf16.msra.mxu3 %v1035_v8 }
 0xb67   :  { %1931 = vmatmul.msk.bf16.vlgmr.msra.gmra.mxu2 %vm129_vm8, %v1122_v11 }
 0xb68   :  { %1928 = vmatmul.msk.bf16.vlgmr.msra.gmra.mxu3 %vm129_vm8, %v1007_v12 }
 0xb69   :  { %1160 = vmatpush.bf16.msrb.mxu3 %v1151_v9 }
 0xb6a   :  { %v2143_v16 = vpop.eup %2142 }
 0xb6b   :  { %v1262_v13 = vpop.permute.xlu2 %1261  ;;  %v1230_v14 = vpop.xlane.xlu0 %1229  ;;  %v1121_v18 = vmul.f32 %v2143_v16, %v2627_v34 }
 0xb6c   :  { %v1267_v15 = vsel %vm212_vm9, %v1262_v13, 0  ;;  %2144 = vrcp.f32 %v1230_v14 }
 0xb6d   :  { %1276 = vmatpush.bf16.msra.mxu3 %v1267_v15  ;;  %v1123_v21 = vpack.c.bf16 %v1121_v18, %v1121_v18 }
 0xb72   :  { %v2145_v17 = vpop.eup %2144 }
 0xb73   :  { %v1236_v19 = vmul.f32 %v2145_v17, %v2633_v38 }
 0xb75   :  { %v1238_v20 = vpack.c.bf16 %v1236_v19, %v1236_v19 }
 0xb77   :  { %1935 = vmatmul.msk.bf16.vlgmr.msrb.gmra.mxu2 %vm129_vm8, %v1238_v20 }
 0xb78   :  { %1932 = vmatmul.msk.bf16.vlgmr.msrb.gmra.mxu3 %vm129_vm8, %v1123_v21  ;;  %v1433_v21 = vperm.slane %v2531_v37, 3 }
 0xb83   :  { %v1349_v22 = vpop.xlane.xlu0 %1348 }
 0xb8e   :  { %v1233_v23 = vpop.xlane.xlu1 %1232 }
 0xb8f   :  { %2146 = vrcp.f32 %v1233_v23 }
 0xb90   :  { %2148 = vrcp.f32 %v1349_v22 }
 0xb95   :  { %v2147_v24 = vpop.eup %2146 }
 0xb96   :  { %v1237_v25 = vmul.f32 %v2147_v24, %v2133_v33  ;;  %v1378_v26 = vpop.permute.xlu0 %1377  ;;  %v2149_v30 = vpop.eup %2148 }
 0xb97   :  { %v1383_v28 = vsel %vm212_vm9, %v1378_v26, 0  ;;  %v1353_v31 = vmul.f32 %v2149_v30, %v2639_v45 }
 0xb98   :  { %v1239_v29 = vpack.c.bf16 %v1237_v25, %v1237_v25  ;;  %1392 = vmatpush.bf16.msrb.mxu3 %v1383_v28 }
 0xb99   :  { %v1355_v36 = vpack.c.bf16 %v1353_v31, %v1353_v31 }
 0xb9a   :  { %1936 = vmatmul.msk.bf16.vlgmr.msra.gmra.mxu3 %vm129_vm8, %v1239_v29 }
 0xba4   :  { %v1346_v32 = vpop.xlane.xlu2 %1345 }
 0xba5   :  { %2150 = vrcp.f32 %v1346_v32 }
 0xba6   :  { %v1357_v34 = vpop.permute.xlu1 %1356 }
 0xba7   :  { %v1362_v35 = vsel %vm212_vm9, %v1357_v34, 0 }
 0xba8   :  { %1371 = vmatpush.bf16.msra.mxu2 %v1362_v35 }
 0xbaa   :  { %1940 = vmatmul.msk.bf16.vlgmr.msrb.gmra.mxu3 %vm129_vm8, %v1355_v36 }
 0xbab   :  { %v2151_v38 = vpop.eup %2150 }
 0xbac   :  { %v1352_v39 = vmul.f32 %v2151_v38, %v2648_v56  ;;  %v1943_v56 = vld [vmem:[%s2809_s2 + $0x8] sm:$0xf] }
 0xbad   :  { %v1944_v58 = vor.u32 %v2008_v57, %v1943_v56 }
 0xbae   :  { %v1354_v40 = vpack.c.bf16 %v1352_v39, %v1352_v39  ;;  %v1447_v5 = vpop.permute.xlu1 %1446 }
 0xbaf   :  { %1459 = vmatpush.bf16.msrb.mxu0 %v1447_v5 }
 0xbb0   :  { %1939 = vmatmul.msk.bf16.vlgmr.msra.gmra.mxu2 %vm129_vm8, %v1354_v40 }
 0xbda   :  { %v1025_v41 = vpop.f32.mrf.mxu2 }
 0xbe2   :  { %v1027_v42 = vpop.f32.mrf.mxu2 }
 0xbea   :  { %v1141_v54 = vpop.f32.mrf.mxu2 }
 0xbeb   :  { %v1046_v43 = vpop.f32.mrf.mxu3 }
 0xbf2   :  { %v1143_v27 = vpop.f32.mrf.mxu2 }
 0xbf3   :  { %v1048_v45 = vpop.f32.mrf.mxu3  ;;  %v2012_v27 = vld [vmem:[%s2810_s3 + $0x10] sm:$0xff] }
 0xbf4   :  { %v2010_v45 = vld [vmem:[%s2810_s3] sm:$0xff] }
 0xbfa   :  { %v1257_v46 = vpop.f32.mrf.mxu2 }
 0xbfb   :  { %v1162_v55 = vpop.f32.mrf.mxu3 }
 0xbfc   :  { %v2053_v33 = vpack.i.bf16 %v1162_v55, %v1141_v54  ;;  %v2013_v55 = vld [vmem:[%s2810_s3 + $0x18] sm:$0xff] }
 0xbfe   :  { %2054 = vrot.lane.b32.xlu0 %v2053_v33, %s2213_s25 }
 0xc02   :  { %v1259_v47 = vpop.f32.mrf.mxu2 }
 0xc03   :  { %v1164_v48 = vpop.f32.mrf.mxu3 }
 0xc06   :  { %1444 = vrot.lane.b32.xlu0 %v1944_v58, %s2202_s7 }
 0xc1d   :  { %v1278_v59 = vpop.f32.mrf.mxu3 }
 0xc1e   :  { %v2058_v60 = vpack.i.bf16 %v1278_v59, %v1257_v46 }
 0xc20   :  { %2059 = vrot.lane.b32.xlu2 %v2058_v60, %s2214_s26 }
 0xc25   :  { %v1280_v61 = vpop.f32.mrf.mxu3 }
 0xc2d   :  { %v1394_v1 = vpop.f32.mrf.mxu3 }
 0xc33   :  { %v1373_v2 = vpop.f32.mrf.mxu2 }
 0xc34   :  { %v2063_v44 = vpack.i.bf16 %v1394_v1, %v1373_v2 }
 0xc35   :  { %v1396_v3 = vpop.f32.mrf.mxu3 }
 0xc36   :  { %2064 = vrot.lane.b32.xlu1 %v2063_v44, %s2215_s13  ;;  %v1513_v3 = vperm.slane %v2531_v37, 4 }
 0xc3b   :  { %v1375_v4 = vpop.f32.mrf.mxu2 }
 0xc70   :  { %v2055_v6 = vpop.permute.xlu0 %2054 }
 0xc71   :  { %v2057_v7 = vunpack.i.h.bf16 %v2055_v6  ;;  %v2056_v63 = vunpack.i.l.bf16 %v2055_v6 }
 0xc73   :  { %v1423_v12 = vsel %vm129_vm8, %v1046_v43, %v2057_v7  ;;  %v1422_v13 = vsel %vm129_vm8, %v1025_v41, %v2056_v63 }
 0xc78   :  { %v1445_v0 = vpop.permute.xlu0 %1444 }
 0xc79   :  { %1460 = vmatpush.bf16.msrb.mxu0 %v1445_v0  ;;  %v1516_v0 = vperm.slane %v2531_v37, 5 }
 0xc7a   :  { %v2060_v62 = vpop.permute.xlu2 %2059 }
 0xc7b   :  { %v2062_v8 = vunpack.i.h.bf16 %v2060_v62  ;;  %v2061_v9 = vunpack.i.l.bf16 %v2060_v62 }
 0xc7d   :  { %v1424_v16 = vsel %vm624_vm10, %v1422_v13, %v2061_v9  ;;  %v1425_v17 = vsel %vm624_vm10, %v1423_v12, %v2062_v8 }
 0xca8   :  { %v2065_v11 = vpop.permute.xlu1 %2064 }
 0xca9   :  { %v2067_v14 = vunpack.i.h.bf16 %v2065_v11  ;;  %v2066_v15 = vunpack.i.l.bf16 %v2065_v11 }
 0xcab   :  { %v1426_v18 = vsel %vm627_vm11, %v1424_v16, %v2066_v15  ;;  %v1427_v19 = vsel %vm627_vm11, %v1425_v17, %v2067_v14  ;;  %v1520_v15 = vperm.slane %v2531_v37, 6 }
 0xcac   :  { %v1432_v20 = vpack.c.bf16 %v1427_v19, %v1426_v18 }
 0xcae   :  { %1949 = vmatmul.msk.bf16.vlgmr.msrb.gmra.mxu0 %vm27_vm0, %v1432_v20 }
 0xd2b   :  { %v1462_v22 = vpop.f32.mrf.mxu0 }
 0xd2c   :  { %v1463_v23 = vadd.f32 %v1462_v22, %v1433_v21 }
 0xd2e   :  { %v1467_v24 = vadd.f32 %v1463_v23, %v2539_v53 }
 0xd30   :  { %v1469_v25 = vsel %vm27_vm0, %v1467_v24, 0.0 }
 0xd31   :  { %1470 = vadd.xlane.f32.xlu1 %v1469_v25 }
 0xd33   :  { %v1464_v26 = vpop.f32.mrf.mxu0 }
 0xd34   :  { %v1465_v28 = vadd.f32 %v1464_v26, %v1433_v21 }
 0xd36   :  { %v1468_v29 = vadd.f32 %v1465_v28, %v2536_v51 }
 0xd38   :  { %v1472_v30 = vsel %vm27_vm0, %v1468_v29, 0.0 }
 0xd39   :  { %1473 = vadd.xlane.f32.xlu0 %v1472_v30 }
 0xd4d   :  { %1523 = vrot.lane.b32.xlu0 %v1948_v52, %s2208_s17 }
 0xd55   :  { %1596 = vrot.lane.b32.xlu0 %v2012_v27, %s2202_s7 }
 0xd5d   :  { %1594 = vrot.lane.b32.xlu0 %v2011_v50, %s2202_s7 }
 0xda4   :  { %v1471_v31 = vpop.xlane.xlu1 %1470 }
 0xda5   :  { %v1475_v32 = vmul.f32 %v1471_v31, %v2256_v10 }
 0xda7   :  { %v1477_v34 = vsub.f32 %v1467_v24, %v1475_v32 }
 0xda9   :  { %v1479_v35 = vmul.f32 %v1477_v34, %v1477_v34 }
 0xdab   :  { %v1481_v36 = vsel %vm27_vm0, %v1479_v35, 0.0 }
 0xdac   :  { %v1474_v53 = vpop.xlane.xlu0 %1473  ;;  %1482 = vadd.xlane.f32.xlu2 %v1481_v36 }
 0xdad   :  { %v1476_v38 = vmul.f32 %v1474_v53, %v2256_v10 }
 0xdaf   :  { %v1478_v39 = vsub.f32 %v1468_v29, %v1476_v38 }
 0xdb1   :  { %v1480_v40 = vmul.f32 %v1478_v39, %v1478_v39 }
 0xdb3   :  { %v1484_v51 = vsel %vm27_vm0, %v1480_v40, 0.0 }
 0xdb4   :  { %1485 = vadd.xlane.f32.xlu1 %v1484_v51 }
 0xdbf   :  { %v1524_v42 = vpop.permute.xlu0 %1523 }
 0xdc0   :  { %1536 = vmatpush.bf16.msrb.mxu1 %v1524_v42  ;;  %v1571_v42 = vperm.slane %v2531_v37, 7 }
 0xdc4   :  { %1598 = vrot.lane.b32.xlu2 %v2013_v55, %s2202_s7 }
 0xdc7   :  { %v1597_v14 = vpop.permute.xlu0 %1596 }
 0xdcd   :  { %1521 = vrot.lane.b32.xlu1 %v1944_v58, %s2208_s17 }
 0xdcf   :  { %v1595_v16 = vpop.permute.xlu0 %1594 }
 0xdd5   :  { %1592 = vrot.lane.b32.xlu1 %v2010_v45, %s2202_s7 }
 0xe1f   :  { %v1483_v41 = vpop.xlane.xlu2 %1482 }
 0xe20   :  { %v1487_v54 = vmul.f32 %v1483_v41, %v2256_v10 }
 0xe22   :  { %v1489_v43 = vadd.f32 1e-12, %v1487_v54 }
 0xe24   :  { %2152 = vrsqrt.f32 %v1489_v43  ;;  %vm1497_vm9 = vweird.f32 %v1489_v43 }
 0xe27   :  { %v1486_v46 = vpop.xlane.xlu1 %1485  ;;  %v1599_v13 = vpop.permute.xlu2 %1598 }
 0xe28   :  { %v1488_v33 = vmul.f32 %v1486_v46, %v2256_v10  ;;  %1611 = vmatpush.bf16.msrb.mxu2 %v1599_v13 }
 0xe2a   :  { %v2153_v47 = vpop.eup %2152  ;;  %v1490_v48 = vadd.f32 1e-12, %v1488_v33 }
 0xe2b   :  { %v1492_v49 = vmul.f32 %v2153_v47, %v1489_v43  ;;  %vm1498_vm8 = vweird.f32 %v2153_v47 }
 0xe2c   :  { %2154 = vrsqrt.f32 %v1490_v48  ;;  %vm1499_vm10 = vmor %vm1497_vm9, %vm1498_vm8  ;;  %vm1507_vm14 = vweird.f32 %v1490_v48  ;;  %1612 = vmatpush.bf16.msrb.mxu2 %v1597_v14 }
 0xe2d   :  { %v1493_v52 = vmul.f32 %v2153_v47, %v1492_v49 }
 0xe2f   :  { %v1494_v56 = vmul.f32 0.5, %v1493_v52 }
 0xe30   :  { %1613 = vmatpush.bf16.msrb.mxu2 %v1595_v16 }
 0xe31   :  { %v1495_v57 = vsub.f32 1.5, %v1494_v56 }
 0xe32   :  { %v2155_v58 = vpop.eup %2154 }
 0xe33   :  { %v1496_v59 = vmul.f32 %v2153_v47, %v1495_v57  ;;  %v1502_v60 = vmul.f32 %v2155_v58, %v1490_v48  ;;  %vm1508_vm11 = vweird.f32 %v2155_v58 }
 0xe34   :  { %vm1509_vm15 = vmor %vm1507_vm14, %vm1508_vm11 }
 0xe35   :  { %v1503_v61 = vmul.f32 %v2155_v58, %v1502_v60  ;;  %v1500_v1 = vsel %vm1499_vm10, %v2153_v47, %v1496_v59 }
 0xe36   :  { %v1511_v4 = vmul.f32 %v1500_v1, %v1477_v34  ;;  %v2015_v1 = vld [vmem:[%s2809_s2 + $0x44] sm:$0xf0] }
 0xe37   :  { %v1504_v2 = vmul.f32 0.5, %v1503_v61  ;;  %v1974_v61 = vld [vmem:[%s2809_s2 + $0x34] sm:$0xf] }
 0xe38   :  { %v1514_v62 = vmul.f32 %v1513_v3, %v1511_v4  ;;  %v1970_v4 = vld [vmem:[%s2809_s2 + $0xc] sm:$0xf] }
 0xe39   :  { %v1505_v44 = vsub.f32 1.5, %v1504_v2  ;;  %v1975_v2 = vor.u32 %v2015_v1, %v1974_v61  ;;  %v1987_v1 = vld [vmem:[%s2809_s2 + $0x34] sm:$0xf] }
 0xe3a   :  { %v1517_v9 = vadd.f32 %v1516_v0, %v1514_v62 }
 0xe3b   :  { %v1506_v5 = vmul.f32 %v2155_v58, %v1505_v44  ;;  %1700 = vmatpush.bf16.msra.mxu3 %v1975_v2  ;;  %v2019_v2 = vld [vmem:[%s2809_s2 + $0x44] sm:$0xf0] }
 0xe3d   :  { %v1510_v6 = vsel %vm1509_vm15, %v2155_v58, %v1506_v5  ;;  %v2014_v5 = vld [vmem:[%s2809_s2 + $0x1c] sm:$0xf0] }
 0xe3e   :  { %v1512_v7 = vmul.f32 %v1510_v6, %v1478_v39 }
 0xe3f   :  { %v1522_v63 = vpop.permute.xlu1 %1521 }
 0xe40   :  { %v1515_v8 = vmul.f32 %v1513_v3, %v1512_v7  ;;  %1537 = vmatpush.bf16.msrb.mxu1 %v1522_v63 }
 0xe42   :  { %v1518_v11 = vadd.f32 %v1516_v0, %v1515_v8  ;;  %v1971_v0 = vor.u32 %v2014_v5, %v1970_v4 }
 0xe44   :  { %v1519_v12 = vpack.c.bf16 %v1518_v11, %v1517_v9  ;;  %1701 = vmatpush.bf16.msra.mxu3 %v1971_v0 }
 0xe46   :  { %1950 = vmatmul.msk.bf16.vlgmr.msrb.gmra.mxu1 %vm27_vm0, %v1519_v12 }
 0xe47   :  { %v1593_v19 = vpop.permute.xlu1 %1592 }
 0xe48   :  { %1614 = vmatpush.bf16.msrb.mxu2 %v1593_v19 }
 0xec3   :  { %v1539_v17 = vpop.f32.mrf.mxu1 }
 0xec4   :  { %v1540_v18 = vadd.f32 %v1539_v17, %v1520_v15 }
 0xec6   :  { %v1544_v20 = vmul.f32 %v1540_v18, %v1540_v18 }
 0xec8   :  { %v1546_v21 = vmul.f32 %v1544_v20, %v1540_v18 }
 0xeca   :  { %v1548_v22 = vmul.f32 0.044715, %v1546_v21 }
 0xecb   :  { %v1541_v23 = vpop.f32.mrf.mxu1 }
 0xecc   :  { %v1550_v24 = vadd.f32 %v1548_v22, %v1540_v18  ;;  %v1542_v25 = vadd.f32 %v1541_v23, %v1520_v15 }
 0xece   :  { %v1552_v26 = vmul.f32 0.7978846, %v1550_v24  ;;  %v1545_v28 = vmul.f32 %v1542_v25, %v1542_v25 }
 0xed0   :  { %v1547_v29 = vmul.f32 %v1545_v28, %v1542_v25  ;;  %2156 = vtanh.f32 %v1552_v26 }
 0xed2   :  { %v1549_v30 = vmul.f32 0.044715, %v1547_v29 }
 0xed4   :  { %v1551_v31 = vadd.f32 %v1549_v30, %v1542_v25 }
 0xed6   :  { %v1553_v32 = vmul.f32 0.7978846, %v1551_v31  ;;  %v2157_v34 = vpop.eup %2156 }
 0xed7   :  { %v1556_v35 = vadd.f32 1.0, %v2157_v34 }
 0xed8   :  { %2158 = vtanh.f32 %v1553_v32 }
 0xed9   :  { %v1558_v53 = vmul.f32 0.5, %v1556_v35 }
 0xedb   :  { %v1560_v40 = vmul.f32 %v1558_v53, %v1540_v18  ;;  %v2755_v18 = vld [vmem:[%s2811_s4 + $0x10] sm:$0x3f] }
 0xedc   :  { %v1667_v22 = vperm.slane %v2755_v18, 0  ;;  %v1670_v26 = vperm.slane %v2755_v18, 1  ;;  %v1678_v35 = vperm.slane %v2755_v18, 2 }
 0xede   :  { %v2159_v36 = vpop.eup %2158 }
 0xedf   :  { %v1557_v38 = vadd.f32 1.0, %v2159_v36 }
 0xee1   :  { %v1559_v39 = vmul.f32 0.5, %v1557_v38 }
 0xee3   :  { %v1561_v51 = vmul.f32 %v1559_v39, %v1542_v25 }
 0xee5   :  { %v1570_v41 = vpack.c.bf16 %v1561_v51, %v1560_v40 }
 0xee7   :  { %1967 = vmatmul.msk.bf16.vlgmr.msrb.gmra.mxu2 %vm808_vm3, %v1570_v41 }
 0xf6a   :  { %v1616_v54 = vpop.f32.mrf.mxu2 }
 0xf6b   :  { %v1617_v43 = vadd.f32 %v1616_v54, %v1571_v42 }
 0xf6d   :  { %v1621_v27 = vadd.f32 %v1617_v43, %v1517_v9 }
 0xf6f   :  { %v1623_v45 = vsel %vm27_vm0, %v1621_v27, 0.0 }
 0xf70   :  { %1624 = vadd.xlane.f32.xlu2 %v1623_v45 }
 0xf72   :  { %v1618_v46 = vpop.f32.mrf.mxu2 }
 0xf73   :  { %v1619_v55 = vadd.f32 %v1618_v46, %v1571_v42 }
 0xf75   :  { %v1622_v33 = vadd.f32 %v1619_v55, %v1518_v11 }
 0xf77   :  { %v1626_v47 = vsel %vm27_vm0, %v1622_v33, 0.0 }
 0xf78   :  { %1627 = vadd.xlane.f32.xlu0 %v1626_v47 }
 0xfe3   :  { %v1625_v48 = vpop.xlane.xlu2 %1624 }
 0xfe4   :  { %v1629_v49 = vmul.f32 %v1625_v48, %v2256_v10 }
 0xfe6   :  { %v1631_v50 = vsub.f32 %v1621_v27, %v1629_v49 }
 0xfe8   :  { %v1633_v52 = vmul.f32 %v1631_v50, %v1631_v50 }
 0xfea   :  { %v1635_v56 = vsel %vm27_vm0, %v1633_v52, 0.0 }
 0xfeb   :  { %v1628_v37 = vpop.xlane.xlu0 %1627  ;;  %1636 = vadd.xlane.f32.xlu1 %v1635_v56 }
 0xfec   :  { %v1630_v57 = vmul.f32 %v1628_v37, %v2256_v10 }
 0xfee   :  { %v1632_v58 = vsub.f32 %v1622_v33, %v1630_v57 }
 0xff0   :  { %v1634_v59 = vmul.f32 %v1632_v58, %v1632_v58 }
 0xff2   :  { %v1638_v60 = vsel %vm27_vm0, %v1634_v59, 0.0  ;;  %v1979_v59 = vld [vmem:[%s2809_s2 + $0xc] sm:$0xf] }
 0xff3   :  { %1639 = vadd.xlane.f32.xlu2 %v1638_v60  ;;  %v2017_v60 = vld [vmem:[%s2809_s2 + $0x1c] sm:$0xf0] }
 0xff4   :  { %v1980_v61 = vor.u32 %v2017_v60, %v1979_v59 }
0x105e   :  { %v1637_v44 = vpop.xlane.xlu1 %1636 }
0x105f   :  { %v1641_v3 = vmul.f32 %v1637_v44, %v2256_v10  ;;  %v1988_v44 = vor.u32 %v2019_v2, %v1987_v1 }
0x1061   :  { %v1643_v6 = vadd.f32 1e-12, %v1641_v3 }
0x1063   :  { %2160 = vrsqrt.f32 %v1643_v6  ;;  %vm1651_vm2 = vweird.f32 %v1643_v6 }
0x1066   :  { %v1640_v62 = vpop.xlane.xlu2 %1639 }
0x1067   :  { %v1642_v7 = vmul.f32 %v1640_v62, %v2256_v10 }
0x1069   :  { %v2161_v63 = vpop.eup %2160  ;;  %v1644_v8 = vadd.f32 1e-12, %v1642_v7 }
0x106a   :  { %v1646_v9 = vmul.f32 %v2161_v63, %v1643_v6  ;;  %vm1652_vm1 = vweird.f32 %v2161_v63 }
0x106b   :  { %2162 = vrsqrt.f32 %v1644_v8  ;;  %vm1653_vm3 = vmor %vm1651_vm2, %vm1652_vm1  ;;  %vm1661_vm5 = vweird.f32 %v1644_v8 }
0x106c   :  { %v1647_v11 = vmul.f32 %v2161_v63, %v1646_v9 }
0x106e   :  { %v1648_v12 = vmul.f32 0.5, %v1647_v11  ;;  %v2018_v11 = vld [vmem:[%s2809_s2 + $0x38] sm:$0xf] }
0x1070   :  { %v1649_v13 = vsub.f32 1.5, %v1648_v12  ;;  %v1989_v12 = vld [vmem:[%s2809_s2 + $0x48] sm:$0xf0] }
0x1071   :  { %v2163_v14 = vpop.eup %2162 }
0x1072   :  { %v1650_v15 = vmul.f32 %v2161_v63, %v1649_v13  ;;  %v1656_v16 = vmul.f32 %v2163_v14, %v1644_v8  ;;  %vm1662_vm4 = vweird.f32 %v2163_v14  ;;  %v1992_v13 = vor.u32 %v2018_v11, %v1989_v12 }
0x1073   :  { %vm1663_vm6 = vmor %vm1661_vm5, %vm1662_vm4 }
0x1074   :  { %v1657_v17 = vmul.f32 %v2163_v14, %v1656_v16  ;;  %v1654_v19 = vsel %vm1653_vm3, %v2161_v63, %v1650_v15  ;;  %v1981_v15 = vld [vmem:[%s2809_s2 + $0x20] sm:$0xf0] }
0x1075   :  { %v1665_v23 = vmul.f32 %v1654_v19, %v1631_v50 }
0x1076   :  { %v1658_v20 = vmul.f32 0.5, %v1657_v17 }
0x1077   :  { %v1668_v28 = vmul.f32 %v1667_v22, %v1665_v23 }
0x1078   :  { %v1659_v21 = vsub.f32 1.5, %v1658_v20 }
0x1079   :  { %v1671_v31 = vadd.f32 %v1670_v26, %v1668_v28 }
0x107a   :  { %v1660_v24 = vmul.f32 %v2163_v14, %v1659_v21 }
0x107c   :  { %v1664_v25 = vsel %vm1663_vm6, %v2163_v14, %v1660_v24  ;;  %v2016_v14 = vld [vmem:[%s2809_s2 + $0x10] sm:$0xf]  ;;  %s2216_s2 = smov [#allocation2]  }
0x107d   :  { %v1666_v29 = vmul.f32 %v1664_v25, %v1632_v58  ;;  %v1984_v16 = vor.u32 %v2016_v14, %v1981_v15 }
0x107f   :  { %v1669_v30 = vmul.f32 %v1667_v22, %v1666_v29 }
0x1081   :  { %v1672_v32 = vadd.f32 %v1670_v26, %v1669_v30 }
0x1083   :  { %v1677_v34 = vpack.c.bf16 %v1672_v32, %v1671_v31 }
0x1085   :  { %1976 = vmatmul.msk.bf16.vlgmr.msra.gmra.mxu3 %vm27_vm0, %v1677_v34 }
0x1108   :  { %v1703_v36 = vpop.f32.mrf.mxu3 }
0x1109   :  { %v1704_v53 = vadd.f32 %v1703_v36, %v1678_v35 }
0x110b   :  { %v1708_v38 = vmul.f32 %v1704_v53, %v1704_v53 }
0x110d   :  { %v1710_v39 = vmul.f32 %v1708_v38, %v1704_v53 }
0x110f   :  { %v1712_v40 = vmul.f32 0.044715, %v1710_v39 }
0x1110   :  { %v1705_v51 = vpop.f32.mrf.mxu3 }
0x1111   :  { %v1706_v41 = vadd.f32 %v1705_v51, %v1678_v35  ;;  %v1714_v42 = vadd.f32 %v1712_v40, %v1704_v53  ;;  %v1770_v51 = vperm.slane %v2755_v18, 3 }
0x1113   :  { %v1709_v54 = vmul.f32 %v1706_v41, %v1706_v41  ;;  %v1716_v43 = vmul.f32 0.7978846, %v1714_v42 }
0x1115   :  { %v1711_v27 = vmul.f32 %v1709_v54, %v1706_v41  ;;  %2164 = vtanh.f32 %v1716_v43 }
0x1117   :  { %v1713_v45 = vmul.f32 0.044715, %v1711_v27 }
0x1119   :  { %v1715_v46 = vadd.f32 %v1713_v45, %v1706_v41  ;;  %v1773_v45 = vperm.slane %v2755_v18, 4 }
0x111b   :  { %v2165_v55 = vpop.eup %2164  ;;  %v1717_v33 = vmul.f32 0.7978846, %v1715_v46 }
0x111c   :  { %v1720_v47 = vadd.f32 1.0, %v2165_v55 }
0x111d   :  { %2166 = vtanh.f32 %v1717_v33 }
0x111e   :  { %v1722_v48 = vmul.f32 0.5, %v1720_v47 }
0x1120   :  { %v1724_v49 = vmul.f32 %v1722_v48, %v1704_v53 }
0x1122   :  { %v1726_v50 = vsel %vm27_vm0, %v1724_v49, 0.0 }
0x1123   :  { %v2167_v52 = vpop.eup %2166  ;;  %1727 = vadd.xlane.f32.xlu0 %v1726_v50  ;;  %v1781_v50 = vperm.slane %v2755_v18, 5 }
0x1124   :  { %v1721_v56 = vadd.f32 1.0, %v2167_v52 }
0x1126   :  { %v1723_v37 = vmul.f32 0.5, %v1721_v56 }
0x1128   :  { %v1725_v57 = vmul.f32 %v1723_v37, %v1706_v41 }
0x112a   :  { %v1729_v58 = vsel %vm27_vm0, %v1725_v57, 0.0 }
0x112b   :  { %1730 = vadd.xlane.f32.xlu1 %v1729_v58 }
0x1137   :  { %1798 = vrot.lane.b32.xlu0 %v1980_v61, %s2202_s7 }
0x1144   :  { %1802 = vrot.lane.b32.xlu1 %v1988_v44, %s2202_s7 }
0x1196   :  { %v1728_v3 = vpop.xlane.xlu0 %1727 }
0x1197   :  { %v1732_v4 = vmul.f32 %v1728_v3, %v2256_v10 }
0x1199   :  { %v1734_v5 = vsub.f32 %v1724_v49, %v1732_v4 }
0x119b   :  { %v1736_v6 = vmul.f32 %v1734_v5, %v1734_v5 }
0x119d   :  { %v1738_v0 = vsel %vm27_vm0, %v1736_v6, 0.0 }
0x119e   :  { %v1731_v62 = vpop.xlane.xlu1 %1730  ;;  %1739 = vadd.xlane.f32.xlu2 %v1738_v0 }
0x119f   :  { %v1733_v7 = vmul.f32 %v1731_v62, %v2256_v10 }
0x11a1   :  { %v1735_v63 = vsub.f32 %v1725_v57, %v1733_v7 }
0x11a3   :  { %v1737_v8 = vmul.f32 %v1735_v63, %v1735_v63 }
0x11a5   :  { %v1741_v9 = vsel %vm27_vm0, %v1737_v8, 0.0 }
0x11a6   :  { %1742 = vadd.xlane.f32.xlu0 %v1741_v9 }
0x11a9   :  { %v1799_v17 = vpop.permute.xlu0 %1798 }
0x11b6   :  { %1804 = vrot.lane.b32.xlu2 %v1992_v13, %s2202_s7  ;;  %v1803_v22 = vpop.permute.xlu1 %1802 }
0x11ba   :  { %1800 = vrot.lane.b32.xlu0 %v1984_v16, %s2202_s7  ;;  %s1834_s7 = sshll.u32 %s2216_s2, 4  ;;  %s1835_s7 = int_to_ptr.vmem [resolvable:$true] %s1834_s7 }
0x1211   :  { %v1740_v19 = vpop.xlane.xlu2 %1739 }
0x1212   :  { %v1744_v20 = vmul.f32 %v1740_v19, %v2256_v10 }
0x1214   :  { %v1746_v21 = vadd.f32 1e-12, %v1744_v20 }
0x1216   :  { %2168 = vrsqrt.f32 %v1746_v21  ;;  %vm1754_vm13 = vweird.f32 %v1746_v21 }
0x1219   :  { %v1743_v23 = vpop.xlane.xlu0 %1742  ;;  %v1805_v24 = vpop.permute.xlu2 %1804 }
0x121a   :  { %v1745_v25 = vmul.f32 %v1743_v23, %v2256_v10  ;;  %v1808_v26 = vsel %vm1806_vm7, %v1803_v22, %v1805_v24 }
0x121b   :  { %1820 = vmatpush.bf16.msra.mxu0 %v1808_v26 }
0x121c   :  { %v2169_v28 = vpop.eup %2168  ;;  %v1747_v29 = vadd.f32 1e-12, %v1745_v25 }
0x121d   :  { %v1749_v30 = vmul.f32 %v2169_v28, %v1746_v21  ;;  %vm1755_vm12 = vweird.f32 %v2169_v28 }
0x121e   :  { %2170 = vrsqrt.f32 %v1747_v29  ;;  %vm1756_vm8 = vmor %vm1754_vm13, %vm1755_vm12  ;;  %vm1764_vm10 = vweird.f32 %v1747_v29 }
0x121f   :  { %v1750_v31 = vmul.f32 %v2169_v28, %v1749_v30 }
0x1221   :  { %v1751_v32 = vmul.f32 0.5, %v1750_v31 }
0x1223   :  { %v1752_v34 = vsub.f32 1.5, %v1751_v32 }
0x1224   :  { %v2171_v35 = vpop.eup %2170 }
0x1225   :  { %v1753_v36 = vmul.f32 %v2169_v28, %v1752_v34  ;;  %v1759_v53 = vmul.f32 %v2171_v35, %v1747_v29  ;;  %vm1765_vm9 = vweird.f32 %v2171_v35 }
0x1226   :  { %vm1766_vm11 = vmor %vm1764_vm10, %vm1765_vm9 }
0x1227   :  { %v1760_v38 = vmul.f32 %v2171_v35, %v1759_v53  ;;  %v1757_v39 = vsel %vm1756_vm8, %v2169_v28, %v1753_v36 }
0x1228   :  { %v1768_v41 = vmul.f32 %v1757_v39, %v1734_v5 }
0x1229   :  { %v1761_v40 = vmul.f32 0.5, %v1760_v38 }
0x122a   :  { %v1771_v46 = vmul.f32 %v1770_v51, %v1768_v41 }
0x122b   :  { %v1762_v10 = vsub.f32 1.5, %v1761_v40 }
0x122c   :  { %v1801_v42 = vpop.permute.xlu0 %1800  ;;  %v1774_v47 = vadd.f32 %v1773_v45, %v1771_v46 }
0x122d   :  { %v1763_v54 = vmul.f32 %v2171_v35, %v1762_v10  ;;  %v1807_v43 = vsel %vm1806_vm7, %v1799_v17, %v1801_v42 }
0x122e   :  { %1821 = vmatpush.bf16.msra.mxu0 %v1807_v43 }
0x122f   :  { %v1767_v27 = vsel %vm1766_vm11, %v2171_v35, %v1763_v54 }
0x1230   :  { %v1769_v55 = vmul.f32 %v1767_v27, %v1735_v63 }
0x1232   :  { %v1772_v33 = vmul.f32 %v1770_v51, %v1769_v55 }
0x1234   :  { %v1775_v48 = vadd.f32 %v1773_v45, %v1772_v33 }
0x1236   :  { %v1780_v49 = vpack.c.bf16 %v1775_v48, %v1774_v47 }
0x1238   :  { %1993 = vmatmul.msk.bf16.vlgmr.msra.gmra.mxu0 %vm27_vm0, %v1780_v49 }
0x12b5   :  { %v1823_v52 = vpop.f32.mrf.mxu0 }
0x12b6   :  { %v1824_v56 = vadd.f32 %v1823_v52, %v1781_v50 }
0x12b8   :  { %1828 = vst [vmem:[#allocation2] sm:$0xff] %v1824_v56 }
0x12bd   :  { %v1825_v37 = vpop.f32.mrf.mxu0 }
0x12be   :  { %v1826_v57 = vadd.f32 %v1825_v37, %v1781_v50 }
0x12c0   :  { %1829 = vst [vmem:[#allocation2 + $0x8] sm:$0xff] %v1826_v57 }
0x12c1   :  { %1842 = dma.vmem_to_hbm [thread:$0]  %s1835_s7, 256, %s1837_s22, [#allocation3], %s2217_s23, %s2217_s23, %s2213_s25  }
0x12c2   :  { %2198 = dma.done.wait [#allocation3], 256  }
0x12c3   :  { %2199 = vsyncadd [#allocation3], 4294967040 }
0x12c4   :  { %1847 = vsyncpa [#allocation3], 1 }

</bundles_post_ra>
